<compile_context>
chip_gen: v7x
topology: tpu7x:2x2x1
jax: 0.10.0
libtpu: 0.0.40
codegen_flags: <defaults>
</compile_context>

<pallas_src>
import jax
import jax.numpy as jnp
from jax.experimental import pallas as pl
from jax.experimental.pallas import tpu as pltpu

_LANE = 128


def tanh_attention_kernel(x_ref, mask_ref, w1_ref, b1_ref, w2r_ref,
                          wfct_ref, bfc_ref, y_ref):
    # x:    (block_b*S, H)  bf16      mask: (block_b, S) f32
    # w1:   (H, H2) bf16              b1:   (1, H2) f32
    # w2r:  (1, H2) f32 (attn2 weight as a lane-dense row)
    # wfct: (num_out, H) f32          bfc:  (1, num_out) f32
    rows, H = x_ref.shape
    bB, S = mask_ref.shape
    num_out = y_ref.shape[1]

    x = x_ref[...]                                                     # (rows, H) bf16

    # attn1 = tanh(x @ W1 + b1): bf16 MXU inputs, f32 accumulation, f32 tanh (EUP).
    a1 = jnp.tanh(jnp.dot(x, w1_ref[...], preferred_element_type=jnp.float32)
                  + b1_ref[...])                                       # (rows, H2) f32

    # attn2 (output width 1): VPU multiply + lane reduce, kept as a (rows, 1) column.
    a2 = jnp.sum(a1 * w2r_ref[...], axis=-1, keepdims=True)            # (rows, 1) f32

    # softmax over the sequence axis; only the tiny 1-lane column gets relaid out.
    logits = a2.reshape(bB, S) + mask_ref[...]
    m = jnp.max(logits, axis=-1, keepdims=True)
    e = jnp.exp(logits - m)
    attn = e / jnp.sum(e, axis=-1, keepdims=True)                      # exact division

    # h[b] = sum_s attn[b, s] * x[b, s, :] : scale x's rows by the attention column
    # (same flattened layout, no lane->sublane relayout), then sublane-group reduce.
    wx = x.astype(jnp.float32) * attn.reshape(rows, 1)                 # (rows, H) f32
    h = jnp.sum(wx.reshape(bB, S, H), axis=1)                          # (bB, H) f32

    # y = fc(dropout(h)); dropout = identity (eval mode).  num_out is tiny, so do
    # the projection as num_out VPU multiply + lane reduces instead of an MXU pass.
    cols = [jnp.sum(h * wfct_ref[j:j + 1, :], axis=-1, keepdims=True)
            for j in range(num_out)]
    y = jnp.concatenate(cols, axis=-1) + bfc_ref[...]
    y_ref[...] = y.astype(y_ref.dtype)


def _pad(n, m):
    return -(-n // m) * m


def _chip_config():
    """Return (vmem_budget_bytes, min_grid_steps) for the local TPU generation."""
    kind = ""
    try:
        kind = jax.devices()[0].device_kind.lower()
    except Exception:
        pass
    if "v7" in kind or "7x" in kind:
        # v7x: 64 MiB VMEM per TensorCore, 2 TCs per chip -> modest budget and
        # >= 2 grid steps so dimension_semantics=("parallel",) uses both cores.
        return 36 << 20, 2
    if "v6" in kind or "v5" in kind or "v4" in kind:
        # Single-TC generations with 128 MiB physical VMEM: spend it on big tiles.
        return 96 << 20, 1
    # Unknown / future generation: v7x-safe defaults.
    return 36 << 20, 2


def _pick_block_b(B, S, H, H2, num_out, vmem_budget, min_grid):
    """Largest batch tile fitting the VMEM budget (tiles + intermediates, lane-padded),
    that divides B, is a multiple of 16 (falling back to 8), and leaves >= min_grid
    grid steps so multi-TensorCore chips get work on every core."""
    hp, h2p, sp = _pad(H, _LANE), _pad(H2, _LANE), _pad(S, _LANE)
    # Per batch row: bf16 x tile x2 buffers + f32 mask x2 buffers + f32 intermediates
    # (a1, x cast to f32, attention-weighted x, h, softmax temporaries).
    per_row = S * (12 * hp + 4 * h2p) + 24 * sp + 4 * hp + 8 * _pad(num_out, _LANE)
    weight_bytes = 2 * H * h2p + 4 * (2 * h2p + num_out * hp + _LANE)
    avail = max(vmem_budget - weight_bytes - (2 << 20), per_row)
    cap = min(max(int(avail // per_row), 1), B)
    if min_grid > 1 and B >= 8 * min_grid:
        cap = min(cap, B // min_grid)
    for align in (16, 8):
        bb = (cap // align) * align
        while bb >= align:
            if B % bb == 0:
                return bb
            bb -= align
    return B  # tiny / awkward batch: one full-batch block


def tanh_attention(x, mask, w1, b1, w2, wfc, bfc, *, block_b=None):
    B, S, H = x.shape
    H2 = w1.shape[1]
    num_out = wfc.shape[1]

    vmem_budget, min_grid = _chip_config()
    if block_b is None:
        block_b = _pick_block_b(B, S, H, H2, num_out, vmem_budget, min_grid)
    assert B % block_b == 0, f"block_b={block_b} must divide B={B}"
    grid = (B // block_b,)
    rows = block_b * S

    # HBM-side prep.  The (B*S, H) reshape is a free metadata change; the bf16 casts
    # of x / W1 halve the kernel's streamed bytes (in a real model the activations
    # would already arrive in bf16 and the casts fold away).
    x2d = x.reshape(B * S, H).astype(jnp.bfloat16)
    w1b = jnp.asarray(w1, jnp.bfloat16)
    b1r = jnp.asarray(b1, jnp.float32).reshape(1, H2)
    w2r = jnp.asarray(w2, jnp.float32).reshape(1, H2)      # attn2 weight, lane-dense row
    wfct = jnp.asarray(wfc, jnp.float32).T                 # (num_out, H) lane-dense rows
    bfcr = jnp.asarray(bfc, jnp.float32).reshape(1, num_out)
    maskf = jnp.asarray(mask, jnp.float32)

    def in_specs(single_buffer_weights):
        wkw = {"pipeline_mode": pl.Buffered(1)} if single_buffer_weights else {}
        return [
            pl.BlockSpec((rows, H), lambda i: (i, 0)),              # x rows (pipelined)
            pl.BlockSpec((block_b, S), lambda i: (i, 0)),           # mask   (pipelined)
            pl.BlockSpec((H, H2), lambda i: (0, 0), **wkw),         # W1     (resident)
            pl.BlockSpec((1, H2), lambda i: (0, 0), **wkw),         # b1
            pl.BlockSpec((1, H2), lambda i: (0, 0), **wkw),         # attn2 row
            pl.BlockSpec((num_out, H), lambda i: (0, 0), **wkw),    # fc weight rows
            pl.BlockSpec((1, num_out), lambda i: (0, 0), **wkw),    # fc bias
        ]

    # Advisory cost estimate so XLA schedules around the custom call sensibly.
    flops = (2 * B * S * H * H2 + 2 * B * S * H2 + 6 * B * S
             + 2 * B * S * H + 2 * B * H * num_out)
    transcendentals = B * S * H2 + B * S
    bytes_accessed = (2 * B * S * H + 4 * B * S + 4 * B * num_out
                      + 2 * H * H2 + 4 * (2 * H2 + H * num_out + num_out))
    cost = pl.CostEstimate(flops=flops, transcendentals=transcendentals,
                           bytes_accessed=bytes_accessed)

    def build(single_buffer_weights):
        return pl.pallas_call(
            tanh_attention_kernel,
            out_shape=jax.ShapeDtypeStruct((B, num_out), jnp.float32),
            grid_spec=pltpu.PrefetchScalarGridSpec(
                num_scalar_prefetch=0,
                grid=grid,
                in_specs=in_specs(single_buffer_weights),
                out_specs=pl.BlockSpec((block_b, num_out), lambda i: (i, 0)),
            ),
            compiler_params=pltpu.CompilerParams(
                dimension_semantics=("parallel",),
                vmem_limit_bytes=int(vmem_budget),
            ),
            cost_estimate=cost,
        )

    args = (x2d, maskf, w1b, b1r, w2r, wfct, bfcr)
    try:
        return build(True)(*args)
    except Exception:
        # TODO(synk): pl.Buffered(1) single-buffered weight specs unsupported on this
        # jax version; retry with default double-buffered weight specs.
        return build(False)(*args)


def reference(x, mask, w1, b1, w2, wfc, bfc):
    a1 = jnp.tanh(jnp.einsum('bsh,hk->bsk', x, w1) + b1)
    a2 = jnp.einsum('bsk,ko->bso', a1, w2)[..., 0]
    attn = jax.nn.softmax(a2 + mask, axis=1)
    h = jnp.einsum('bsh,bs->bh', x, attn)
    return h @ wfc + bfc


if __name__ == "__main__":
    B, S, H, NUM_OUT = 16, 8, 32, 2
    H2 = H // 2

    key = jax.random.PRNGKey(0)
    kx, k1, k2, k3, k4, k5 = jax.random.split(key, 6)

    x = jax.random.normal(kx, (B, S, H), dtype=jnp.float32)

    # Additive mask: 0 for valid positions, -1e9 for padded ones.
    mask = jnp.zeros((B, S), dtype=jnp.float32)
    mask = mask.at[1, 6:].set(-1e9)
    mask = mask.at[5, 3:].set(-1e9)
    mask = mask.at[13, 7:].set(-1e9)

    # Deterministic parameter init (shapes follow the module's __init__, transposed
    # to (in, out) so the kernel computes x @ W + b).
    w1 = 0.1 * jax.random.normal(k1, (H, H2), dtype=jnp.float32)
    b1 = 0.1 * jax.random.normal(k2, (1, H2), dtype=jnp.float32)
    w2 = 0.1 * jax.random.normal(k3, (H2, 1), dtype=jnp.float32)
    wfc = 0.1 * jax.random.normal(k4, (H, NUM_OUT), dtype=jnp.float32)
    bfc = 0.1 * jax.random.normal(k5, (1, NUM_OUT), dtype=jnp.float32)

    y_ref = reference(x, mask, w1, b1, w2, wfc, bfc)

    # Generation-aware automatic batch tile.
    y_auto = jax.block_until_ready(tanh_attention(x, mask, w1, b1, w2, wfc, bfc))
    # Forced block_b=8 -> grid=(2,): exercises the multi-step pipelined path
    # (VMEM-resident weights, double-buffered x/mask tiles) on every generation.
    y_pipe = jax.block_until_ready(
        tanh_attention(x, mask, w1, b1, w2, wfc, bfc, block_b=8))

    assert y_auto.shape == (B, NUM_OUT) and y_pipe.shape == (B, NUM_OUT)
    # Tolerance covers bf16 streaming of x / W1 (softmax, reductions and the final
    # projection are exact f32; observed error is ~1e-3 against the f32 reference).
    assert jnp.allclose(y_auto, y_ref, atol=2e-2, rtol=2e-2), (y_auto, y_ref)
    assert jnp.allclose(y_pipe, y_ref, atol=2e-2, rtol=2e-2), (y_pipe, y_ref)

    print("KERNEL_OK")
</pallas_src>

<mosaic_0001>
module attributes {stable_mosaic.version = 11 : i64} {
  func.func @tanh_attention_kernel(%arg0: i32, %arg1: memref<64x32xbf16, #tpu.memory_space<vmem>>, %arg2: memref<8x8xf32, #tpu.memory_space<vmem>>, %arg3: memref<32x16xbf16, #tpu.memory_space<vmem>>, %arg4: memref<1x16xf32, #tpu.memory_space<vmem>>, %arg5: memref<1x16xf32, #tpu.memory_space<vmem>>, %arg6: memref<2x32xf32, #tpu.memory_space<vmem>>, %arg7: memref<1x2xf32, #tpu.memory_space<vmem>>, %arg8: memref<8x2xf32, #tpu.memory_space<vmem>>) attributes {dimension_semantics = [#tpu.dimension_semantics<parallel>], iteration_bounds = array<i64: 2>, scalar_prefetch = 0 : i64, scratch_operands = 0 : i64, tpu.core_type = #tpu.core_type<tc>, window_params = [{transform_indices = @transform_0, window_bounds = array<i64: 64, 32>}, {transform_indices = @transform_1, window_bounds = array<i64: 8, 8>}, {pipeline_mode = #tpu.pipeline_mode<synchronous>, transform_indices = @transform_2, window_bounds = array<i64: 32, 16>}, {pipeline_mode = #tpu.pipeline_mode<synchronous>, transform_indices = @transform_3, window_bounds = array<i64: 1, 16>}, {pipeline_mode = #tpu.pipeline_mode<synchronous>, transform_indices = @transform_4, window_bounds = array<i64: 1, 16>}, {pipeline_mode = #tpu.pipeline_mode<synchronous>, transform_indices = @transform_5, window_bounds = array<i64: 2, 32>}, {pipeline_mode = #tpu.pipeline_mode<synchronous>, transform_indices = @transform_6, window_bounds = array<i64: 1, 2>}, {transform_indices = @transform_7, window_bounds = array<i64: 8, 2>}]} {
    %c0 = arith.constant 0 : index
    %c0_0 = arith.constant 0 : index
    %0 = vector.load %arg1[%c0, %c0_0] : memref<64x32xbf16, #tpu.memory_space<vmem>>, vector<64x32xbf16>
    %c0_1 = arith.constant 0 : index
    %c0_2 = arith.constant 0 : index
    %1 = vector.load %arg3[%c0_1, %c0_2] : memref<32x16xbf16, #tpu.memory_space<vmem>>, vector<32x16xbf16>
    %cst = arith.constant dense<0.000000e+00> : vector<64x16xf32>
    %2 = tpu.matmul %0, %1, %cst {dimension_numbers = #tpu.dot_dimension_numbers<[1], [0], [0], [1], [0, 0, 1, 1], [], []>} : vector<64x32xbf16>, vector<32x16xbf16>, vector<64x16xf32> -> vector<64x16xf32>
    %c0_3 = arith.constant 0 : index
    %c0_4 = arith.constant 0 : index
    %3 = vector.load %arg4[%c0_3, %c0_4] : memref<1x16xf32, #tpu.memory_space<vmem>>, vector<1x16xf32>
    %4 = vector.broadcast %3 : vector<1x16xf32> to vector<64x16xf32>
    %5 = arith.addf %2, %4 : vector<64x16xf32>
    %6 = math.tanh %5 : vector<64x16xf32>
    %c0_5 = arith.constant 0 : index
    %c0_6 = arith.constant 0 : index
    %7 = vector.load %arg5[%c0_5, %c0_6] : memref<1x16xf32, #tpu.memory_space<vmem>>, vector<1x16xf32>
    %8 = vector.broadcast %7 : vector<1x16xf32> to vector<64x16xf32>
    %9 = arith.mulf %6, %8 : vector<64x16xf32>
    %cst_7 = arith.constant dense<0.000000e+00> : vector<64xf32>
    %10 = vector.multi_reduction <add>, %9, %cst_7 [1] : vector<64x16xf32> to vector<64xf32>
    %11 = vector.shape_cast %10 : vector<64xf32> to vector<64x1xf32>
    %12 = vector.shape_cast %11 : vector<64x1xf32> to vector<8x8xf32>
    %c0_8 = arith.constant 0 : index
    %c0_9 = arith.constant 0 : index
    %13 = vector.load %arg2[%c0_8, %c0_9] : memref<8x8xf32, #tpu.memory_space<vmem>>, vector<8x8xf32>
    %14 = arith.addf %12, %13 : vector<8x8xf32>
    %cst_10 = arith.constant dense<0xFF800000> : vector<8xf32>
    %15 = vector.multi_reduction <maximumf>, %14, %cst_10 [1] : vector<8x8xf32> to vector<8xf32>
    %16 = vector.shape_cast %15 : vector<8xf32> to vector<8x1xf32>
    %17 = vector.broadcast %16 : vector<8x1xf32> to vector<8x8xf32>
    %18 = arith.subf %14, %17 : vector<8x8xf32>
    %19 = math.exp %18 : vector<8x8xf32>
    %cst_11 = arith.constant dense<0.000000e+00> : vector<8xf32>
    %20 = vector.multi_reduction <add>, %19, %cst_11 [1] : vector<8x8xf32> to vector<8xf32>
    %21 = vector.shape_cast %20 : vector<8xf32> to vector<8x1xf32>
    %22 = vector.broadcast %21 : vector<8x1xf32> to vector<8x8xf32>
    %23 = arith.divf %19, %22 : vector<8x8xf32>
    %24 = arith.extf %0 : vector<64x32xbf16> to vector<64x32xf32>
    %25 = vector.shape_cast %23 : vector<8x8xf32> to vector<64x1xf32>
    %26 = vector.broadcast %25 : vector<64x1xf32> to vector<64x32xf32>
    %27 = arith.mulf %24, %26 : vector<64x32xf32>
    %28 = vector.shape_cast %27 : vector<64x32xf32> to vector<8x8x32xf32>
    %cst_12 = arith.constant dense<0.000000e+00> : vector<8x32xf32>
    %29 = vector.multi_reduction <add>, %28, %cst_12 [1] : vector<8x8x32xf32> to vector<8x32xf32>
    %c0_13 = arith.constant 0 : index
    %c0_14 = arith.constant 0 : index
    %30 = vector.load %arg6[%c0_13, %c0_14] : memref<2x32xf32, #tpu.memory_space<vmem>>, vector<1x32xf32>
    %31 = vector.broadcast %30 : vector<1x32xf32> to vector<8x32xf32>
    %32 = arith.mulf %29, %31 : vector<8x32xf32>
    %cst_15 = arith.constant dense<0.000000e+00> : vector<8xf32>
    %33 = vector.multi_reduction <add>, %32, %cst_15 [1] : vector<8x32xf32> to vector<8xf32>
    %34 = vector.shape_cast %33 : vector<8xf32> to vector<8x1xf32>
    %c1 = arith.constant 1 : index
    %c0_16 = arith.constant 0 : index
    %35 = vector.load %arg6[%c1, %c0_16] : memref<2x32xf32, #tpu.memory_space<vmem>>, vector<1x32xf32>
    %36 = vector.broadcast %35 : vector<1x32xf32> to vector<8x32xf32>
    %37 = arith.mulf %29, %36 : vector<8x32xf32>
    %cst_17 = arith.constant dense<0.000000e+00> : vector<8xf32>
    %38 = vector.multi_reduction <add>, %37, %cst_17 [1] : vector<8x32xf32> to vector<8xf32>
    %39 = vector.shape_cast %38 : vector<8xf32> to vector<8x1xf32>
    %40 = tpu.concatenate %34, %39 in 1 : vector<8x1xf32>, vector<8x1xf32> -> vector<8x2xf32>
    %c0_18 = arith.constant 0 : index
    %c0_19 = arith.constant 0 : index
    %41 = vector.load %arg7[%c0_18, %c0_19] : memref<1x2xf32, #tpu.memory_space<vmem>>, vector<1x2xf32>
    %42 = vector.broadcast %41 : vector<1x2xf32> to vector<8x2xf32>
    %43 = arith.addf %40, %42 : vector<8x2xf32>
    %c0_20 = arith.constant 0 : index
    %c0_21 = arith.constant 0 : index
    %44 = vector.load %arg8[%c0_20, %c0_21] : memref<8x2xf32, #tpu.memory_space<vmem>>, vector<8x2xf32>
    tpu.vector_store %arg8[%c0_20, %c0_21], %43 {strides = array<i32>} : memref<8x2xf32, #tpu.memory_space<vmem>>, vector<8x2xf32>,
    return
  }
  func.func @transform_0(%arg0: i32) -> (i32, i32) {
    %c0_i32 = arith.constant 0 : i32
    %c0_i32_0 = arith.constant 0 : i32
    return %arg0, %c0_i32 : i32, i32
  }
  func.func @transform_1(%arg0: i32) -> (i32, i32) {
    %c0_i32 = arith.constant 0 : i32
    %c0_i32_0 = arith.constant 0 : i32
    return %arg0, %c0_i32 : i32, i32
  }
  func.func @transform_2(%arg0: i32) -> (i32, i32) {
    %c0_i32 = arith.constant 0 : i32
    %c0_i32_0 = arith.constant 0 : i32
    %c0_i32_1 = arith.constant 0 : i32
    return %c0_i32, %c0_i32_0 : i32, i32
  }
  func.func @transform_3(%arg0: i32) -> (i32, i32) {
    %c0_i32 = arith.constant 0 : i32
    %c0_i32_0 = arith.constant 0 : i32
    %c0_i32_1 = arith.constant 0 : i32
    return %c0_i32, %c0_i32_0 : i32, i32
  }
  func.func @transform_4(%arg0: i32) -> (i32, i32) {
    %c0_i32 = arith.constant 0 : i32
    %c0_i32_0 = arith.constant 0 : i32
    %c0_i32_1 = arith.constant 0 : i32
    return %c0_i32, %c0_i32_0 : i32, i32
  }
  func.func @transform_5(%arg0: i32) -> (i32, i32) {
    %c0_i32 = arith.constant 0 : i32
    %c0_i32_0 = arith.constant 0 : i32
    %c0_i32_1 = arith.constant 0 : i32
    return %c0_i32, %c0_i32_0 : i32, i32
  }
  func.func @transform_6(%arg0: i32) -> (i32, i32) {
    %c0_i32 = arith.constant 0 : i32
    %c0_i32_0 = arith.constant 0 : i32
    %c0_i32_1 = arith.constant 0 : i32
    return %c0_i32, %c0_i32_0 : i32, i32
  }
  func.func @transform_7(%arg0: i32) -> (i32, i32) {
    %c0_i32 = arith.constant 0 : i32
    %c0_i32_0 = arith.constant 0 : i32
    return %arg0, %c0_i32 : i32, i32
  }
}

module attributes {stable_mosaic.version = 11 : i64} {
  func.func @tanh_attention_kernel(%arg0: i32, %arg1: memref<64x32xbf16, #tpu.memory_space<vmem>>, %arg2: memref<8x8xf32, #tpu.memory_space<vmem>>, %arg3: memref<32x16xbf16, #tpu.memory_space<vmem>>, %arg4: memref<1x16xf32, #tpu.memory_space<vmem>>, %arg5: memref<1x16xf32, #tpu.memory_space<vmem>>, %arg6: memref<2x32xf32, #tpu.memory_space<vmem>>, %arg7: memref<1x2xf32, #tpu.memory_space<vmem>>, %arg8: memref<8x2xf32, #tpu.memory_space<vmem>>) attributes {dimension_semantics = [#tpu.dimension_semantics<parallel>], iteration_bounds = array<i64: 2>, scalar_prefetch = 0 : i64, scratch_operands = 0 : i64, tpu.core_type = #tpu.core_type<tc>, window_params = [{transform_indices = @transform_0, window_bounds = array<i64: 64, 32>}, {transform_indices = @transform_1, window_bounds = array<i64: 8, 8>}, {pipeline_mode = #tpu.pipeline_mode<synchronous>, transform_indices = @transform_2, window_bounds = array<i64: 32, 16>}, {pipeline_mode = #tpu.pipeline_mode<synchronous>, transform_indices = @transform_3, window_bounds = array<i64: 1, 16>}, {pipeline_mode = #tpu.pipeline_mode<synchronous>, transform_indices = @transform_4, window_bounds = array<i64: 1, 16>}, {pipeline_mode = #tpu.pipeline_mode<synchronous>, transform_indices = @transform_5, window_bounds = array<i64: 2, 32>}, {pipeline_mode = #tpu.pipeline_mode<synchronous>, transform_indices = @transform_6, window_bounds = array<i64: 1, 2>}, {transform_indices = @transform_7, window_bounds = array<i64: 8, 2>}]} {
    %c0 = arith.constant 0 : index
    %c0_0 = arith.constant 0 : index
    %0 = vector.load %arg1[%c0, %c0_0] : memref<64x32xbf16, #tpu.memory_space<vmem>>, vector<64x32xbf16>
    %c0_1 = arith.constant 0 : index
    %c0_2 = arith.constant 0 : index
    %1 = vector.load %arg3[%c0_1, %c0_2] : memref<32x16xbf16, #tpu.memory_space<vmem>>, vector<32x16xbf16>
    %cst = arith.constant dense<0.000000e+00> : vector<64x16xf32>
    %2 = tpu.matmul %0, %1, %cst {dimension_numbers = #tpu.dot_dimension_numbers<[1], [0], [0], [1], [0, 0, 1, 1], [], []>} : vector<64x32xbf16>, vector<32x16xbf16>, vector<64x16xf32> -> vector<64x16xf32>
    %c0_3 = arith.constant 0 : index
    %c0_4 = arith.constant 0 : index
    %3 = vector.load %arg4[%c0_3, %c0_4] : memref<1x16xf32, #tpu.memory_space<vmem>>, vector<1x16xf32>
    %4 = vector.broadcast %3 : vector<1x16xf32> to vector<64x16xf32>
    %5 = arith.addf %2, %4 : vector<64x16xf32>
    %6 = math.tanh %5 : vector<64x16xf32>
    %c0_5 = arith.constant 0 : index
    %c0_6 = arith.constant 0 : index
    %7 = vector.load %arg5[%c0_5, %c0_6] : memref<1x16xf32, #tpu.memory_space<vmem>>, vector<1x16xf32>
    %8 = vector.broadcast %7 : vector<1x16xf32> to vector<64x16xf32>
    %9 = arith.mulf %6, %8 : vector<64x16xf32>
    %cst_7 = arith.constant dense<0.000000e+00> : vector<64xf32>
    %10 = vector.multi_reduction <add>, %9, %cst_7 [1] : vector<64x16xf32> to vector<64xf32>
    %11 = vector.shape_cast %10 : vector<64xf32> to vector<64x1xf32>
    %12 = vector.shape_cast %11 : vector<64x1xf32> to vector<8x8xf32>
    %c0_8 = arith.constant 0 : index
    %c0_9 = arith.constant 0 : index
    %13 = vector.load %arg2[%c0_8, %c0_9] : memref<8x8xf32, #tpu.memory_space<vmem>>, vector<8x8xf32>
    %14 = arith.addf %12, %13 : vector<8x8xf32>
    %cst_10 = arith.constant dense<0xFF800000> : vector<8xf32>
    %15 = vector.multi_reduction <maximumf>, %14, %cst_10 [1] : vector<8x8xf32> to vector<8xf32>
    %16 = vector.shape_cast %15 : vector<8xf32> to vector<8x1xf32>
    %17 = vector.broadcast %16 : vector<8x1xf32> to vector<8x8xf32>
    %18 = arith.subf %14, %17 : vector<8x8xf32>
    %19 = math.exp %18 : vector<8x8xf32>
    %cst_11 = arith.constant dense<0.000000e+00> : vector<8xf32>
    %20 = vector.multi_reduction <add>, %19, %cst_11 [1] : vector<8x8xf32> to vector<8xf32>
    %21 = vector.shape_cast %20 : vector<8xf32> to vector<8x1xf32>
    %22 = vector.broadcast %21 : vector<8x1xf32> to vector<8x8xf32>
    %23 = arith.divf %19, %22 : vector<8x8xf32>
    %24 = arith.extf %0 : vector<64x32xbf16> to vector<64x32xf32>
    %25 = vector.shape_cast %23 : vector<8x8xf32> to vector<64x1xf32>
    %26 = vector.broadcast %25 : vector<64x1xf32> to vector<64x32xf32>
    %27 = arith.mulf %24, %26 : vector<64x32xf32>
    %28 = vector.shape_cast %27 : vector<64x32xf32> to vector<8x8x32xf32>
    %cst_12 = arith.constant dense<0.000000e+00> : vector<8x32xf32>
    %29 = vector.multi_reduction <add>, %28, %cst_12 [1] : vector<8x8x32xf32> to vector<8x32xf32>
    %c0_13 = arith.constant 0 : index
    %c0_14 = arith.constant 0 : index
    %30 = vector.load %arg6[%c0_13, %c0_14] : memref<2x32xf32, #tpu.memory_space<vmem>>, vector<1x32xf32>
    %31 = vector.broadcast %30 : vector<1x32xf32> to vector<8x32xf32>
    %32 = arith.mulf %29, %31 : vector<8x32xf32>
    %cst_15 = arith.constant dense<0.000000e+00> : vector<8xf32>
    %33 = vector.multi_reduction <add>, %32, %cst_15 [1] : vector<8x32xf32> to vector<8xf32>
    %34 = vector.shape_cast %33 : vector<8xf32> to vector<8x1xf32>
    %c1 = arith.constant 1 : index
    %c0_16 = arith.constant 0 : index
    %35 = vector.load %arg6[%c1, %c0_16] : memref<2x32xf32, #tpu.memory_space<vmem>>, vector<1x32xf32>
    %36 = vector.broadcast %35 : vector<1x32xf32> to vector<8x32xf32>
    %37 = arith.mulf %29, %36 : vector<8x32xf32>
    %cst_17 = arith.constant dense<0.000000e+00> : vector<8xf32>
    %38 = vector.multi_reduction <add>, %37, %cst_17 [1] : vector<8x32xf32> to vector<8xf32>
    %39 = vector.shape_cast %38 : vector<8xf32> to vector<8x1xf32>
    %40 = tpu.concatenate %34, %39 in 1 : vector<8x1xf32>, vector<8x1xf32> -> vector<8x2xf32>
    %c0_18 = arith.constant 0 : index
    %c0_19 = arith.constant 0 : index
    %41 = vector.load %arg7[%c0_18, %c0_19] : memref<1x2xf32, #tpu.memory_space<vmem>>, vector<1x2xf32>
    %42 = vector.broadcast %41 : vector<1x2xf32> to vector<8x2xf32>
    %43 = arith.addf %40, %42 : vector<8x2xf32>
    %c0_20 = arith.constant 0 : index
    %c0_21 = arith.constant 0 : index
    %44 = vector.load %arg8[%c0_20, %c0_21] : memref<8x2xf32, #tpu.memory_space<vmem>>, vector<8x2xf32>
    tpu.vector_store %arg8[%c0_20, %c0_21], %43 {strides = array<i32>} : memref<8x2xf32, #tpu.memory_space<vmem>>, vector<8x2xf32>,
    return
  }
  func.func @transform_0(%arg0: i32) -> (i32, i32) {
    %c0_i32 = arith.constant 0 : i32
    %c0_i32_0 = arith.constant 0 : i32
    return %arg0, %c0_i32 : i32, i32
  }
  func.func @transform_1(%arg0: i32) -> (i32, i32) {
    %c0_i32 = arith.constant 0 : i32
    %c0_i32_0 = arith.constant 0 : i32
    return %arg0, %c0_i32 : i32, i32
  }
  func.func @transform_2(%arg0: i32) -> (i32, i32) {
    %c0_i32 = arith.constant 0 : i32
    %c0_i32_0 = arith.constant 0 : i32
    %c0_i32_1 = arith.constant 0 : i32
    return %c0_i32, %c0_i32_0 : i32, i32
  }
  func.func @transform_3(%arg0: i32) -> (i32, i32) {
    %c0_i32 = arith.constant 0 : i32
    %c0_i32_0 = arith.constant 0 : i32
    %c0_i32_1 = arith.constant 0 : i32
    return %c0_i32, %c0_i32_0 : i32, i32
  }
  func.func @transform_4(%arg0: i32) -> (i32, i32) {
    %c0_i32 = arith.constant 0 : i32
    %c0_i32_0 = arith.constant 0 : i32
    %c0_i32_1 = arith.constant 0 : i32
    return %c0_i32, %c0_i32_0 : i32, i32
  }
  func.func @transform_5(%arg0: i32) -> (i32, i32) {
    %c0_i32 = arith.constant 0 : i32
    %c0_i32_0 = arith.constant 0 : i32
    %c0_i32_1 = arith.constant 0 : i32
    return %c0_i32, %c0_i32_0 : i32, i32
  }
  func.func @transform_6(%arg0: i32) -> (i32, i32) {
    %c0_i32 = arith.constant 0 : i32
    %c0_i32_0 = arith.constant 0 : i32
    %c0_i32_1 = arith.constant 0 : i32
    return %c0_i32, %c0_i32_0 : i32, i32
  }
  func.func @transform_7(%arg0: i32) -> (i32, i32) {
    %c0_i32 = arith.constant 0 : i32
    %c0_i32_0 = arith.constant 0 : i32
    return %arg0, %c0_i32 : i32, i32
  }
}

</mosaic_0001>

<bundles_post_ra>
// kernel: tpu_custom_call.1
= control target key start
LH: loop header
LB: loop body
LE: loop exit
PB: predicated region body
PF: predicated region fallthrough
CT: control target
= control target key end

     0   :  { %s1263_s24 = smov 0   ;;  %s1512_s0 = inlined_call_operand.vmem [shape: bf16[128,32], index: 0, kind: input, shape index: {}]   ;;  %s1513_s1 = inlined_call_operand.vmem [shape: f32[16,8], index: 1, kind: input, shape index: {}]   ;;  %s1514_s2 = inlined_call_operand.vmem [shape: bf16[32,16], index: 2, kind: input, shape index: {}]   ;;  %s1515_s3 = inlined_call_operand.vmem [shape: f32[1,16], index: 3, kind: input, shape index: {}]   ;;  %s1516_s4 = inlined_call_operand.vmem [shape: f32[1,16], index: 4, kind: input, shape index: {}]   ;;  %s1517_s5 = inlined_call_operand.vmem [shape: f32[2,32], index: 5, kind: input, shape index: {}]   ;;  %s1518_s6 = inlined_call_operand.vmem [shape: f32[1,2], index: 6, kind: input, shape index: {}]   ;;  %s1519_s7 = inlined_call_operand.vmem [shape: f32[16,2], index: 7, kind: output, shape index: {}]  }
   0x1 LB: > { %s1097_s25 = sadd.s32 4294967295, %s1220_s24   ;;  %p1101_p0 = scmp.ge.s32.totalorder %s1220_s24, 1  ;;  %s1220_s24 = sphi %s1263_s24, %s17_s24  }
   0x2   : > { %p247_p1 = scmp.lt.s32.totalorder %s1220_s24, 3 }
   0x4   : > { %p248_p2 = pnand %p1101_p0, %p247_p1 }
   0x5   : > { %v1156_v0 = vld [vmem:[%s1514_s2] sm:$0xff] (!%p248_p2)   ;;  %s1102_s28 = sshll.u32 (!%p248_p2), %s1097_s25, 3  ;;  %v476_v1 = vlaneseq (!%p248_p2)  ;;  %v1157_v2 = vld [vmem:[%s1514_s2 + $0x8] sm:$0xff] (!%p248_p2)   ;;  %p288_p4 = scmp.lt.s32.totalorder (!%p248_p2), %s1097_s25, 1  ;;  %vm348_vm0 = vcmask (!%p248_p2), 261120   ;;  %vm449_vm1 = vcmask (!%p248_p2), 130048  }
   0x6   : > { %251 = sbr.rel (%p248_p2) target bundleno = 1340 (0x53c), region = 48  ;;  %p283_p3 = scmp.lt.s32.totalorder (!%p248_p2), %s1102_s28, 15  ;;  %1129 = vmatprep.subr.bf16.mxu0 (!%p248_p2), %v1156_v0  ;;  %1141 = vmatprep.subr.bf16.mxu1 (!%p248_p2), %v1156_v0  ;;  %v1106_v21 = vld [vmem:[%s1515_s3] ss:$0 sm:$0xff] (!%p248_p2)  ;;  %v1222_v63 = vmov (!%p248_p2), 0   ;;  %vm614_vm2 = vcmask (!%p248_p2), 1041409  }
   0x7   : > { %v1278_v3 = vshrl.u32 (!%p248_p2), %v476_v1, 7  ;;  %1130 = vmatpush3.bf16.msra.mxu0 (!%p248_p2), %v1156_v0  ;;  %1143 = vmatpush3.bf16.msra.mxu1 (!%p248_p2), %v1156_v0  ;;  %v1117_v38 = vld [vmem:[%s1516_s4] ss:$0 sm:$0xff] (!%p248_p2)  ;;  %vm616_vm3 = vcmask (!%p248_p2), 1042434   ;;  %vm618_vm4 = vcmask (!%p248_p2), 1043459   ;;  %vm620_vm5 = vcmask (!%p248_p2), 1044484  }
   0x8   : > { %1131 = vmatprep.subr.bf16.mxu0 (!%p248_p2), %v1157_v2  ;;  %1142 = vmatprep.subr.bf16.mxu1 (!%p248_p2), %v1157_v2  ;;  %vm622_vm6 = vcmask (!%p248_p2), 1045509   ;;  %vm624_vm7 = vcmask (!%p248_p2), 1046534   ;;  %vm626_vm8 = vcmask (!%p248_p2), 1047559   ;;  %vm629_vm9 = vcmask (!%p248_p2), 64512  }
   0x9   : > { %v1283_v4 = vsub.s32 (!%p248_p2), 1, %v1278_v3  ;;  %v1290_v5 = vsub.s32 (!%p248_p2), 0, %v1278_v3  ;;  %v1304_v9 = vsub.s32 (!%p248_p2), 2, %v1278_v3  ;;  %v1311_v12 = vsub.s32 (!%p248_p2), 4, %v1278_v3  ;;  %1154 = vset.pattern.permute.xlu1 (!%p248_p2), %v1222_v63  ;;  %1155 = vset.pattern.permute.xlu0 (!%p248_p2), %v1222_v63 }
   0xa   : > { %v1328_v16 = vsub.s32 (!%p248_p2), 3, %v1278_v3  ;;  %v1335_v19 = vsub.s32 (!%p248_p2), 5, %v1278_v3  ;;  %v1354_v0 = vsub.s32 (!%p248_p2), 7, %v1278_v3  ;;  %vm1020_vm10 = vcmask (!%p248_p2), 7168  }
   0xb   : > { %1132 = vmatpush3.bf16.msra.mxu0 (!%p248_p2), %v1157_v2  ;;  %1144 = vmatpush3.bf16.msra.mxu1 (!%p248_p2), %v1157_v2  ;;  %vm1030_vm11 = vcmask (!%p248_p2), 15360  }
   0xd   : > { %s1521_s28 = smov (!%p283_p3, %s1102_s28), 15  ;;  %s1523_s25 = smov (!%p288_p4, %s1097_s25), 1 }
   0xe   : > { %s1103_s8 = sshll.u32 %s1521_s28, 2  ;;  %s1104_s12 = sshll.u32 %s1523_s25, 3 }
   0xf   : > { %s286_s11 = scalar_lea.vmem %s1512_s0, %s1103_s8  ;;  %s291_s15 = scalar_lea.vmem %s1513_s1, %s1104_s12 }
  0x10   : > { %v1292_v6 = vld [vmem:[%s286_s11] sm:$0xff]   ;;  %v1294_v7 = vld [vmem:[%s286_s11 + $0x10] sm:$0xff]   ;;  %v1296_v8 = vld [vmem:[%s286_s11 + $0x8] sm:$0xff]   ;;  %s295_s30 = scalar_lea.vmem %s1519_s7, %s1104_s12 }
  0x11   : > { %v1306_v10 = vld [vmem:[%s286_s11 + $0x18] sm:$0xff]   ;;  %v1308_v11 = vld [vmem:[%s291_s15] sm:$0xff]  ;;  %1133 = vmatprep.mubr.msk.bf16.mxu0 %vm348_vm0, %v1292_v6  ;;  %1137 = vmatprep.mubr.msk.bf16.mxu1 %vm348_vm0, %v1294_v7 }
  0x12   : > { %v486_v13 = vrot.slane %v1308_v11, %v1283_v4  ;;  %v479_v14 = vrot.slane %v1308_v11, %v1290_v5  ;;  %1134 = vmatmul.mubr.msk.bf16.vlgmr.msra.gmra.mrb[0].mxu0 %vm348_vm0, %v1296_v8  ;;  %1138 = vmatmul.mubr.msk.bf16.vlgmr.msra.gmra.mrb[0].mxu1 %vm348_vm0, %v1306_v10  ;;  %v493_v15 = vrot.slane %v1308_v11, %v1304_v9 }
  0x13   : > { %v507_v17 = vrot.slane %v1308_v11, %v1311_v12  ;;  %v500_v18 = vrot.slane %v1308_v11, %v1328_v16  ;;  %v514_v20 = vrot.slane %v1308_v11, %v1335_v19  ;;  %v528_v2 = vrot.slane %v1308_v11, %v1354_v0 }
  0x14   : > { %488 = vbcast.lane.b32.xlu1 %v486_v13, 256  ;;  %481 = vbcast.lane.b32.xlu0 %v479_v14, 256  ;;  %v1359_v13 = vsub.s32 6, %v1278_v3 }
  0x16   : > { %v521_v14 = vrot.slane %v1308_v11, %v1359_v13 }
  0x18   : > { %495 = vbcast.lane.b32.xlu1 %v493_v15, 256  ;;  %509 = vbcast.lane.b32.xlu0 %v507_v17, 256 }
  0x1c   : > { %502 = vbcast.lane.b32.xlu1 %v500_v18, 256 }
  0x20   : > { %516 = vbcast.lane.b32.xlu1 %v514_v20, 256 }
  0x86   : > { %v489_v15 = vpop.permute.xlu1 %488  ;;  %v482_v20 = vpop.permute.xlu0 %481 }
  0x8a   : > { %v496_v17 = vpop.permute.xlu1 %495 }
  0x8e   : > { %v503_v18 = vpop.permute.xlu1 %502 }
  0xe5   : > { %v1135_v22 = vpop.f32.mrb[0].mxu0  ;;  %v1139_v23 = vpop.f32.mrb[0].mxu1 }
  0xe6   : > { %v404_v24 = vadd.f32 %v1135_v22, %v1106_v21  ;;  %v420_v25 = vadd.f32 %v1139_v23, %v1106_v21  ;;  %v395_v26 = vpop.f32.mrb[1].mxu0  ;;  %v411_v27 = vpop.f32.mrb[1].mxu1 }
  0xe7   : > { %v396_v28 = vadd.f32 %v1106_v21, %v395_v26  ;;  %v412_v29 = vadd.f32 %v1106_v21, %v411_v27  ;;  %v1136_v30 = vpop.f32.mrb[2].mxu0  ;;  %v1140_v31 = vpop.f32.mrb[2].mxu1 }
  0xe8   : > { %1166 = vtanh.f32 %v404_v24  ;;  %v407_v32 = vadd.f32 %v1136_v30, %v1106_v21  ;;  %v398_v33 = vpop.f32.mrb[3].mxu0  ;;  %v414_v34 = vpop.f32.mrb[3].mxu1  ;;  %v423_v35 = vadd.f32 %v1140_v31, %v1106_v21 }
  0xe9   : > { %1168 = vtanh.f32 %v420_v25  ;;  %v415_v36 = vadd.f32 %v1106_v21, %v414_v34  ;;  %v399_v37 = vadd.f32 %v1106_v21, %v398_v33  ;;  %v517_v21 = vpop.permute.xlu1 %516  ;;  %v510_v22 = vpop.permute.xlu0 %509 }
  0xea   : > { %1170 = vtanh.f32 %v396_v28 }
  0xeb   : > { %1172 = vtanh.f32 %v412_v29 }
  0xec   : > { %1174 = vtanh.f32 %v407_v32 }
  0xed   : > { %1176 = vtanh.f32 %v423_v35 }
  0xee   : > { %1178 = vtanh.f32 %v415_v36 }
  0xef   : > { %1180 = vtanh.f32 %v399_v37 }
  0xf2   : > { %v1167_v39 = vpop.eup %1166 }
  0xf3   : > { %v1169_v40 = vpop.eup %1168  ;;  %v443_v41 = vmul.f32 %v1167_v39, %v1117_v38 }
  0xf4   : > { %v1171_v42 = vpop.eup %1170  ;;  %v447_v43 = vmul.f32 %v1169_v40, %v1117_v38 }
  0xf5   : > { %v1173_v44 = vpop.eup %1172  ;;  %v456_v45 = vsel %vm449_vm1, %v443_v41, 0.0  ;;  %v441_v46 = vmul.f32 %v1171_v42, %v1117_v38  ;;  %v581_v41 = vand.u32 127, %v476_v1 }
  0xf6   : > { %v1175_v47 = vpop.eup %1174  ;;  %v468_v48 = vsel %vm449_vm1, %v447_v43, 0.0  ;;  %457 = vadd.xlane.f32.xlu1 %v456_v45  ;;  %v445_v55 = vmul.f32 %v1173_v44, %v1117_v38 }
  0xf7   : > { %v1177_v49 = vpop.eup %1176  ;;  %469 = vadd.xlane.f32.xlu0 %v468_v48  ;;  %v444_v50 = vmul.f32 %v1175_v47, %v1117_v38  ;;  %v450_v51 = vsel %vm449_vm1, %v441_v46, 0.0  ;;  %v1380_v44 = vsub.s32 %v581_v41, %v1278_v3 }
  0xf8   : > { %v448_v53 = vmul.f32 %v1177_v49, %v1117_v38  ;;  %v1179_v54 = vpop.eup %1178  ;;  %v462_v59 = vsel %vm449_vm1, %v445_v55, 0.0 }
  0xf9   : > { %v459_v52 = vsel %vm449_vm1, %v444_v50, 0.0  ;;  %v1181_v56 = vpop.eup %1180  ;;  %v446_v58 = vmul.f32 %v1179_v54, %v1117_v38 }
  0xfa   : > { %460 = vadd.xlane.f32.xlu1 %v459_v52  ;;  %v471_v57 = vsel %vm449_vm1, %v448_v53, 0.0  ;;  %v442_v60 = vmul.f32 %v1181_v56, %v1117_v38 }
  0xfb   : > { %451 = vadd.xlane.f32.xlu0 %v450_v51  ;;  %v465_v61 = vsel %vm449_vm1, %v446_v58, 0.0 }
  0xfc   : > { %v453_v62 = vsel %vm449_vm1, %v442_v60, 0.0 }
  0xfe   : > { %472 = vadd.xlane.f32.xlu1 %v471_v57 }
  0xff   : > { %463 = vadd.xlane.f32.xlu0 %v462_v59 }
 0x102   : > { %466 = vadd.xlane.f32.xlu1 %v465_v61 }
 0x103   : > { %454 = vadd.xlane.f32.xlu0 %v453_v62 }
 0x113   : > { %530 = vbcast.lane.b32.xlu1 %v528_v2, 256 }
 0x119   : > { %523 = vbcast.lane.b32.xlu0 %v521_v14, 256 }
 0x183   : > { %v458_v23 = vpop.xlane.xlu1 %457 }
 0x184   : > { %v470_v24 = vpop.xlane.xlu0 %469  ;;  %v1363_v25 = vadd.f32 %v496_v17, %v458_v23 }
 0x186   : > { %563 = vperm.xlu1 %1154, %v1363_v25  }
 0x187   : > { %v461_v26 = vpop.xlane.xlu1 %460 }
 0x188   : > { %v452_v27 = vpop.xlane.xlu0 %451  ;;  %v1366_v11 = vadd.f32 %v503_v18, %v461_v26 }
 0x189   : > { %v540_v28 = vadd.f32 %v482_v20, %v452_v27 }
 0x18b   : > { %557 = vperm.xlu0 %1155, %v540_v28   ;;  %v473_v29 = vpop.xlane.xlu1 %472 }
 0x18c   : > { %v464_v30 = vpop.xlane.xlu0 %463 }
 0x18d   : > { %v544_v37 = vadd.f32 %v510_v22, %v464_v30 }
 0x18f   : > { %566 = vperm.xlu0 %1155, %v1366_v11   ;;  %v467_v31 = vpop.xlane.xlu1 %466 }
 0x190   : > { %v1369_v32 = vadd.f32 %v517_v21, %v467_v31  ;;  %v455_v33 = vpop.xlane.xlu0 %454 }
 0x191   : > { %v541_v34 = vadd.f32 %v489_v15, %v455_v33 }
 0x193   : > { %572 = vperm.xlu0 %1155, %v1369_v32   ;;  %560 = vperm.xlu1 %1154, %v541_v34   ;;  %v531_v35 = vpop.permute.xlu1 %530 }
 0x194   : > { %v1372_v36 = vadd.f32 %v531_v35, %v473_v29  ;;  %v524_v38 = vpop.permute.xlu0 %523 }
 0x195   : > { %v1375_v39 = vadd.f32 %v524_v38, %v470_v24 }
 0x197   : > { %578 = vperm.xlu0 %1155, %v1372_v36   ;;  %569 = vperm.xlu1 %1154, %v544_v37  }
 0x19b   : > { %575 = vperm.xlu1 %1154, %v1375_v39  }
 0x205   : > { %v564_v42 = vpop.permute.xlu1 %563 }
 0x206   : > { %v593_v49 = vrot.slane %v564_v42, %v1380_v44 }
 0x20a   : > { %v558_v40 = vpop.permute.xlu0 %557 }
 0x20b   : > { %v585_v46 = vrot.slane %v558_v40, %v1380_v44 }
 0x20e   : > { %v567_v43 = vpop.permute.xlu0 %566 }
 0x20f   : > { %v597_v50 = vrot.slane %v567_v43, %v1380_v44 }
 0x212   : > { %v561_v45 = vpop.permute.xlu1 %560  ;;  %v573_v48 = vpop.permute.xlu0 %572 }
 0x213   : > { %v589_v47 = vrot.slane %v561_v45, %v1380_v44  ;;  %v605_v56 = vrot.slane %v573_v48, %v1380_v44 }
 0x215   : > { %v615_v1 = vsel %vm614_vm2, %v589_v47, %v585_v46 }
 0x216   : > { %v617_v51 = vsel %vm616_vm3, %v593_v49, %v615_v1  ;;  %v570_v3 = vpop.permute.xlu1 %569  ;;  %v579_v55 = vpop.permute.xlu0 %578 }
 0x217   : > { %v601_v52 = vrot.slane %v570_v3, %v1380_v44  ;;  %v619_v53 = vsel %vm618_vm4, %v597_v50, %v617_v51  ;;  %v613_v59 = vrot.slane %v579_v55, %v1380_v44 }
 0x219   : > { %v621_v54 = vsel %vm620_vm5, %v601_v52, %v619_v53 }
 0x21a   : > { %v576_v57 = vpop.permute.xlu1 %575  ;;  %v623_v60 = vsel %vm622_vm6, %v605_v56, %v621_v54 }
 0x21b   : > { %v609_v58 = vrot.slane %v576_v57, %v1380_v44 }
 0x21d   : > { %v625_v61 = vsel %vm624_vm7, %v609_v58, %v623_v60 }
 0x21e   : > { %v627_v62 = vsel %vm626_vm8, %v613_v59, %v625_v61 }
 0x21f   : > { %v630_v63 = vsel %vm629_vm9, %v627_v62, -inf }
 0x220   : > { %631 = vmax.xlane.f32.xlu1 %v630_v63 }
 0x2ad   : > { %v632_v2 = vpop.xlane.xlu1 %631 }
 0x2ae   : > { %v637_v14 = vrot.slane %v632_v2, %v1290_v5  ;;  %v641_v15 = vrot.slane %v632_v2, %v1283_v4  ;;  %v645_v17 = vrot.slane %v632_v2, %v1304_v9  ;;  %v649_v22 = vrot.slane %v632_v2, %v1328_v16 }
 0x2af   : > { %v653_v26 = vrot.slane %v632_v2, %v1311_v12  ;;  %v657_v30 = vrot.slane %v632_v2, %v1335_v19 }
 0x2b0   : > { %v674_v18 = vsub.f32 %v540_v28, %v637_v14  ;;  %v675_v20 = vsub.f32 %v541_v34, %v641_v15  ;;  %v676_v23 = vsub.f32 %v1363_v25, %v645_v17  ;;  %v677_v27 = vsub.f32 %v1366_v11, %v649_v22 }
 0x2b1   : > { %v678_v31 = vsub.f32 %v544_v37, %v653_v26  ;;  %v661_v34 = vrot.slane %v632_v2, %v1359_v13  ;;  %v679_v25 = vsub.f32 %v1369_v32, %v657_v30  ;;  %v665_v11 = vrot.slane %v632_v2, %v1354_v0 }
 0x2b2   : > { %v682_v21 = vmul.f32 1.442695, %v674_v18  ;;  %v684_v24 = vmul.f32 1.442695, %v675_v20  ;;  %v686_v29 = vmul.f32 1.442695, %v676_v23 }
 0x2b3   : > { %v688_v33 = vmul.f32 1.442695, %v677_v27  ;;  %v690_v35 = vmul.f32 1.442695, %v678_v31  ;;  %v680_v37 = vsub.f32 %v1375_v39, %v661_v34  ;;  %v692_v40 = vmul.f32 1.442695, %v679_v25 }
 0x2b4   : > { %1182 = vpow2.f32 %v682_v21  ;;  %v681_v42 = vsub.f32 %v1372_v36, %v665_v11 }
 0x2b5   : > { %1184 = vpow2.f32 %v684_v24  ;;  %v694_v32 = vmul.f32 1.442695, %v680_v37 }
 0x2b6   : > { %1186 = vpow2.f32 %v686_v29  ;;  %v696_v45 = vmul.f32 1.442695, %v681_v42 }
 0x2b7   : > { %1188 = vpow2.f32 %v688_v33 }
 0x2b8   : > { %1190 = vpow2.f32 %v690_v35 }
 0x2b9   : > { %1192 = vpow2.f32 %v692_v40 }
 0x2ba   : > { %1194 = vpow2.f32 %v694_v32 }
 0x2bb   : > { %1196 = vpow2.f32 %v696_v45 }
 0x2be   : > { %v1406_v28 = vpop.eup %1182 }
 0x2bf   : > { %707 = vperm.xlu0 %1155, %v1406_v28   ;;  %v1411_v38 = vpop.eup %1184 }
 0x2c0   : > { %v1416_v41 = vpop.eup %1186 }
 0x2c1   : > { %v1420_v43 = vpop.eup %1188 }
 0x2c2   : > { %v1191_v46 = vpop.eup %1190 }
 0x2c3   : > { %710 = vperm.xlu0 %1155, %v1411_v38   ;;  %v1423_v39 = vpop.eup %1192 }
 0x2c4   : > { %v1426_v47 = vpop.eup %1194 }
 0x2c5   : > { %v1429_v36 = vpop.eup %1196 }
 0x2c7   : > { %713 = vperm.xlu0 %1155, %v1416_v41  }
 0x2cb   : > { %716 = vperm.xlu0 %1155, %v1420_v43  }
 0x2cf   : > { %719 = vperm.xlu0 %1155, %v1191_v46  }
 0x2d3   : > { %722 = vperm.xlu0 %1155, %v1423_v39  }
 0x2d7   : > { %725 = vperm.xlu0 %1155, %v1426_v47  }
 0x2db   : > { %728 = vperm.xlu0 %1155, %v1429_v36  }
 0x33e   : > { %v708_v48 = vpop.permute.xlu0 %707 }
 0x33f   : > { %v733_v54 = vrot.slane %v708_v48, %v1380_v44 }
 0x342   : > { %v711_v49 = vpop.permute.xlu0 %710 }
 0x343   : > { %v737_v52 = vrot.slane %v711_v49, %v1380_v44  ;;  %v830_v49 = vunpack.c.l.bf16 %v1292_v6 }
 0x345   : > { %v762_v58 = vsel %vm614_vm2, %v737_v52, %v733_v54 }
 0x346   : > { %v714_v50 = vpop.permute.xlu0 %713 }
 0x347   : > { %v741_v53 = vrot.slane %v714_v50, %v1380_v44 }
 0x349   : > { %v763_v60 = vsel %vm616_vm3, %v741_v53, %v762_v58  ;;  %v833_v53 = vunpack.c.h.bf16 %v1296_v8 }
 0x34a   : > { %v717_v1 = vpop.permute.xlu0 %716 }
 0x34b   : > { %v745_v55 = vrot.slane %v717_v1, %v1380_v44 }
 0x34d   : > { %v764_v62 = vsel %vm618_vm4, %v745_v55, %v763_v60 }
 0x34e   : > { %v720_v51 = vpop.permute.xlu0 %719 }
 0x34f   : > { %v749_v56 = vrot.slane %v720_v51, %v1380_v44 }
 0x351   : > { %v765_v63 = vsel %vm620_vm5, %v749_v56, %v764_v62 }
 0x352   : > { %v723_v3 = vpop.permute.xlu0 %722 }
 0x353   : > { %v753_v59 = vrot.slane %v723_v3, %v1380_v44 }
 0x355   : > { %v766_v14 = vsel %vm622_vm6, %v753_v59, %v765_v63 }
 0x356   : > { %v726_v57 = vpop.permute.xlu0 %725 }
 0x357   : > { %v757_v61 = vrot.slane %v726_v57, %v1380_v44 }
 0x359   : > { %v767_v17 = vsel %vm624_vm7, %v757_v61, %v766_v14 }
 0x35a   : > { %v729_v2 = vpop.permute.xlu0 %728 }
 0x35b   : > { %v761_v15 = vrot.slane %v729_v2, %v1380_v44 }
 0x35d   : > { %v768_v18 = vsel %vm626_vm8, %v761_v15, %v767_v17 }
 0x35e   : > { %v770_v20 = vsel %vm629_vm9, %v768_v18, 0.0 }
 0x35f   : > { %771 = vadd.xlane.f32.xlu0 %v770_v20 }
 0x3ec   : > { %v772_v21 = vpop.xlane.xlu0 %771 }
 0x3ed   : > { %v793_v22 = vrot.slane %v772_v21, %v1311_v12  ;;  %v781_v23 = vrot.slane %v772_v21, %v1283_v4  ;;  %v785_v24 = vrot.slane %v772_v21, %v1304_v9  ;;  %v777_v26 = vrot.slane %v772_v21, %v1290_v5 }
 0x3ee   : > { %v789_v44 = vrot.slane %v772_v21, %v1328_v16  ;;  %v797_v31 = vrot.slane %v772_v21, %v1335_v19  ;;  %v801_v4 = vrot.slane %v772_v21, %v1359_v13  ;;  %v805_v16 = vrot.slane %v772_v21, %v1354_v0 }
 0x3ef   : > { %1198 = vrcp.f32 %v793_v22  ;;  %v831_v0 = vunpack.c.h.bf16 %v1292_v6  ;;  %v835_v6 = vunpack.c.h.bf16 %v1294_v7  ;;  %v836_v21 = vunpack.c.l.bf16 %v1306_v10 }
 0x3f0   : > { %1200 = vrcp.f32 %v781_v23 }
 0x3f1   : > { %1202 = vrcp.f32 %v785_v24 }
 0x3f2   : > { %1204 = vrcp.f32 %v777_v26 }
 0x3f3   : > { %1206 = vrcp.f32 %v789_v44 }
 0x3f4   : > { %1208 = vrcp.f32 %v797_v31 }
 0x3f5   : > { %1210 = vrcp.f32 %v801_v4 }
 0x3f6   : > { %1212 = vrcp.f32 %v805_v16 }
 0x3f9   : > { %v1199_v27 = vpop.eup %1198 }
 0x3fa   : > { %v1201_v29 = vpop.eup %1200  ;;  %v823_v30 = vmul.f32 %v1199_v27, %v1191_v46 }
 0x3fb   : > { %v817_v12 = vmul.f32 %v1201_v29, %v1411_v38  ;;  %v1203_v33 = vpop.eup %1202 }
 0x3fc   : > { %860 = vperm.xlu0 %1155, %v823_v30   ;;  %v819_v9 = vmul.f32 %v1203_v33, %v1416_v41  ;;  %v1205_v5 = vpop.eup %1204  ;;  %v837_v33 = vunpack.c.h.bf16 %v1306_v10 }
 0x3fd   : > { %845 = vperm.xlu1 %1154, %v817_v12   ;;  %v815_v34 = vmul.f32 %v1205_v5, %v1406_v28  ;;  %v1207_v25 = vpop.eup %1206  ;;  %v834_v28 = vunpack.c.l.bf16 %v1294_v7 }
 0x3fe   : > { %v821_v19 = vmul.f32 %v1207_v25, %v1420_v43  ;;  %v1209_v35 = vpop.eup %1208  ;;  %v832_v43 = vunpack.c.l.bf16 %v1296_v8  ;;  %v1118_v25 = vld [vmem:[%s1517_s5] ss:$0 sm:$0xff] }
 0x3ff   : > { %v825_v38 = vmul.f32 %v1209_v35, %v1423_v39  ;;  %v1211_v11 = vpop.eup %1210 }
 0x400   : > { %v827_v13 = vmul.f32 %v1211_v11, %v1426_v47  ;;  %v1213_v37 = vpop.eup %1212 }
 0x401   : > { %850 = vperm.xlu1 %1154, %v819_v9   ;;  %v829_v40 = vmul.f32 %v1213_v37, %v1429_v36 }
 0x405   : > { %840 = vperm.xlu1 %1154, %v815_v34  }
 0x409   : > { %855 = vperm.xlu1 %1154, %v821_v19   ;;  %v1119_v19 = vld [vmem:[%s1517_s5 + $0x1] ss:$0 sm:$0xff] }
 0x40d   : > { %865 = vperm.xlu1 %1154, %v825_v38  }
 0x411   : > { %870 = vperm.xlu1 %1154, %v827_v13  }
 0x415   : > { %875 = vperm.xlu1 %1154, %v829_v40  }
 0x47b   : > { %v861_v41 = vpop.permute.xlu0 %860 }
 0x47c   : > { %v846_v42 = vpop.permute.xlu1 %845  ;;  %v882_v45 = vmul.f32 %v861_v41, %v834_v28 }
 0x47d   : > { %v879_v32 = vmul.f32 %v846_v42, %v831_v0 }
 0x47e   : > { %v914_v36 = vsel %vm348_vm0, %v882_v45, 0.0 }
 0x47f   : > { %v893_v46 = vsel %vm348_vm0, %v879_v32, 0.0  ;;  %v915_v54 = vrot.slane %v914_v36, 4 }
 0x480   : > { %v894_v39 = vrot.slane %v893_v46, 4  ;;  %v851_v48 = vpop.permute.xlu1 %850 }
 0x481   : > { %v880_v47 = vmul.f32 %v851_v48, %v832_v43  ;;  %v916_v62 = vadd.f32 %v915_v54, %v914_v36 }
 0x482   : > { %v895_v50 = vadd.f32 %v894_v39, %v893_v46 }
 0x483   : > { %v900_v1 = vsel %vm348_vm0, %v880_v47, 0.0  ;;  %v917_v22 = vrot.slane %v916_v62, 2 }
 0x484   : > { %v901_v51 = vrot.slane %v900_v1, 4  ;;  %v841_v3 = vpop.permute.xlu1 %840  ;;  %v896_v56 = vrot.slane %v895_v50, 2 }
 0x485   : > { %v878_v52 = vmul.f32 %v841_v3, %v830_v49  ;;  %v918_v4 = vadd.f32 %v917_v22, %v916_v62 }
 0x486   : > { %v902_v55 = vadd.f32 %v901_v51, %v900_v1  ;;  %v897_v2 = vadd.f32 %v896_v56, %v895_v50 }
 0x487   : > { %v886_v57 = vsel %vm348_vm0, %v878_v52, 0.0  ;;  %v919_v0 = vrot.slane %v918_v4, 1 }
 0x488   : > { %v903_v58 = vrot.slane %v902_v55, 2  ;;  %v887_v59 = vrot.slane %v886_v57, 4  ;;  %v856_v60 = vpop.permute.xlu1 %855  ;;  %v898_v24 = vrot.slane %v897_v2, 1 }
 0x489   : > { %v881_v61 = vmul.f32 %v856_v60, %v833_v53  ;;  %v920_v53 = vadd.f32 %v919_v0, %v918_v4  ;;  %v1120_v0 = vld [vmem:[%s1518_s6] ss:$0 sm:$0xff] }
 0x48a   : > { %v888_v63 = vadd.f32 %v887_v59, %v886_v57  ;;  %v904_v15 = vadd.f32 %v903_v58, %v902_v55  ;;  %v899_v5 = vadd.f32 %v898_v24, %v897_v2 }
 0x48b   : > { %v907_v14 = vsel %vm348_vm0, %v881_v61, 0.0 }
 0x48c   : > { %v889_v17 = vrot.slane %v888_v63, 2  ;;  %v866_v18 = vpop.permute.xlu1 %865  ;;  %v908_v8 = vrot.slane %v907_v14, 4  ;;  %v905_v27 = vrot.slane %v904_v15, 1  ;;  %v948_v42 = vmul.f32 %v1118_v25, %v899_v5 }
 0x48d   : > { %v883_v20 = vmul.f32 %v866_v18, %v835_v6  ;;  %v987_v32 = vmul.f32 %v1119_v19, %v899_v5  ;;  %v990_v18 = vmul.f32 %v1119_v19, %v920_v53 }
 0x48e   : > { %v890_v23 = vadd.f32 %v889_v17, %v888_v63  ;;  %v909_v26 = vadd.f32 %v908_v8, %v907_v14  ;;  %v906_v35 = vadd.f32 %v905_v27, %v904_v15  ;;  %v963_v54 = vrot.slane %v948_v42, 7 }
 0x48f   : > { %v921_v44 = vsel %vm348_vm0, %v883_v20, 0.0  ;;  %v1002_v55 = vrot.slane %v987_v32, 7  ;;  %v951_v17 = vmul.f32 %v1118_v25, %v920_v53 }
 0x490   : > { %v922_v7 = vrot.slane %v921_v44, 4  ;;  %v871_v29 = vpop.permute.xlu1 %870  ;;  %v891_v30 = vrot.slane %v890_v23, 1  ;;  %v910_v31 = vrot.slane %v909_v26, 2  ;;  %v988_v46 = vmul.f32 %v1119_v19, %v906_v35 }
 0x491   : > { %v884_v12 = vmul.f32 %v871_v29, %v836_v21  ;;  %v949_v56 = vmul.f32 %v1118_v25, %v906_v35 }
 0x492   : > { %v923_v9 = vadd.f32 %v922_v7, %v921_v44  ;;  %v911_v16 = vadd.f32 %v910_v31, %v909_v26  ;;  %v892_v37 = vadd.f32 %v891_v30, %v890_v23  ;;  %v1004_v57 = vrot.slane %v988_v46, 6 }
 0x493   : > { %v928_v34 = vsel %vm348_vm0, %v884_v12, 0.0  ;;  %v965_v8 = vrot.slane %v949_v56, 6  ;;  %v969_v30 = vrot.slane %v951_v17, 4  ;;  %v1008_v31 = vrot.slane %v990_v18, 4 }
 0x494   : > { %v924_v38 = vrot.slane %v923_v9, 2  ;;  %v929_v11 = vrot.slane %v928_v34, 4  ;;  %v876_v13 = vpop.permute.xlu1 %875  ;;  %v912_v10 = vrot.slane %v911_v16, 1  ;;  %v947_v49 = vmul.f32 %v1118_v25, %v892_v37 }
 0x495   : > { %v885_v40 = vmul.f32 %v876_v13, %v837_v33  ;;  %v986_v36 = vmul.f32 %v1119_v19, %v892_v37 }
 0x496   : > { %v925_v28 = vadd.f32 %v924_v38, %v923_v9  ;;  %v930_v41 = vadd.f32 %v929_v11, %v928_v34  ;;  %v913_v43 = vadd.f32 %v912_v10, %v911_v16  ;;  %v964_v60 = vsel %vm614_vm2, %v963_v54, %v947_v49 }
 0x497   : > { %v935_v45 = vsel %vm348_vm0, %v885_v40, 0.0  ;;  %v1003_v61 = vsel %vm614_vm2, %v1002_v55, %v986_v36  ;;  %v966_v26 = vsel %vm616_vm3, %v965_v8, %v964_v60 }
 0x498   : > { %v926_v39 = vrot.slane %v925_v28, 1  ;;  %v931_v48 = vrot.slane %v930_v41, 2  ;;  %v936_v47 = vrot.slane %v935_v45, 4  ;;  %v950_v50 = vmul.f32 %v1118_v25, %v913_v43 }
 0x499   : > { %v989_v1 = vmul.f32 %v1119_v19, %v913_v43  ;;  %v1005_v22 = vsel %vm616_vm3, %v1004_v57, %v1003_v61 }
 0x49a   : > { %v927_v51 = vadd.f32 %v926_v39, %v925_v28  ;;  %v932_v3 = vadd.f32 %v931_v48, %v930_v41  ;;  %v937_v52 = vadd.f32 %v936_v47, %v935_v45  ;;  %v967_v6 = vrot.slane %v950_v50, 5 }
 0x49b   : > { %v1006_v62 = vrot.slane %v989_v1, 5 }
 0x49c   : > { %v933_v58 = vrot.slane %v932_v3, 1  ;;  %v938_v59 = vrot.slane %v937_v52, 2  ;;  %v952_v63 = vmul.f32 %v1118_v25, %v927_v51  ;;  %v991_v2 = vmul.f32 %v1119_v19, %v927_v51 }
 0x49d   : > { %v1007_v24 = vsel %vm618_vm4, %v1006_v62, %v1005_v22  ;;  %v968_v29 = vsel %vm618_vm4, %v967_v6, %v966_v26 }
 0x49e   : > { %v934_v14 = vadd.f32 %v933_v58, %v932_v3  ;;  %v939_v15 = vadd.f32 %v938_v59, %v937_v52  ;;  %v971_v44 = vrot.slane %v952_v63, 3  ;;  %v1010_v27 = vrot.slane %v991_v2, 3 }
 0x49f   : > { %v1009_v5 = vsel %vm620_vm5, %v1008_v31, %v1007_v24  ;;  %v970_v16 = vsel %vm620_vm5, %v969_v30, %v968_v29 }
 0x4a0   : > { %v940_v20 = vrot.slane %v939_v15, 1  ;;  %v992_v21 = vmul.f32 %v1119_v19, %v934_v14  ;;  %v953_v23 = vmul.f32 %v1118_v25, %v934_v14  ;;  %v1011_v34 = vsel %vm622_vm6, %v1010_v27, %v1009_v5 }
 0x4a1   : > { %v972_v38 = vsel %vm622_vm6, %v971_v44, %v970_v16 }
 0x4a2   : > { %v941_v7 = vadd.f32 %v940_v20, %v939_v15  ;;  %v1012_v12 = vrot.slane %v992_v21, 2  ;;  %v973_v33 = vrot.slane %v953_v23, 2 }
 0x4a4   : > { %v993_v4 = vmul.f32 %v1119_v19, %v941_v7  ;;  %v954_v9 = vmul.f32 %v1118_v25, %v941_v7  ;;  %v1013_v13 = vsel %vm624_vm7, %v1012_v12, %v1011_v34  ;;  %v974_v37 = vsel %vm624_vm7, %v973_v33, %v972_v38 }
 0x4a6   : > { %v1014_v35 = vrot.slane %v993_v4, 1  ;;  %v975_v11 = vrot.slane %v954_v9, 1 }
 0x4a8   : > { %v1015_v10 = vsel %vm626_vm8, %v1014_v35, %v1013_v13  ;;  %v976_v19 = vsel %vm626_vm8, %v975_v11, %v974_v37 }
 0x4a9   : > { %v1017_v25 = vsel %vm348_vm0, %v1015_v10, 0.0  ;;  %v978_v40 = vsel %vm348_vm0, %v976_v19, 0.0 }
 0x4aa   : > { %1018 = vadd.xlane.f32.xlu0 %v1017_v25  ;;  %979 = vadd.xlane.f32.xlu1 %v978_v40 }
 0x537   : > { %v1019_v28 = vpop.xlane.xlu0 %1018  ;;  %v980_v41 = vpop.xlane.xlu1 %979 }
 0x538   : > { %v1021_v42 = vsel %vm1020_vm10, %v980_v41, %v1019_v28 }
 0x539   : > { %v1029_v32 = vadd.f32 %v1120_v0, %v1021_v42 }
 0x53b   : > { %1031 = vst.msk [vmem:[%s295_s30] sm:$0xff] %vm1030_vm11, %v1029_v32 }
 0x53c PF: > { %s17_s24 = sadd.s32 1, %s1220_s24  }
 0x53d   : > { %p14_p5 = scmp.ge.s32.totalorder %s17_s24, 4  }
 0x53f   :  { %16 = sbr.rel (!%p14_p5) target bundleno = 1 (0x1), region = 81 }

// kernel: tpu_custom_call.1
= control target key start
LH: loop header
LB: loop body
LE: loop exit
PB: predicated region body
PF: predicated region fallthrough
CT: control target
= control target key end

     0   :  { %s1263_s24 = smov 0   ;;  %s1512_s0 = inlined_call_operand.vmem [shape: bf16[128,32], index: 0, kind: input, shape index: {}]   ;;  %s1513_s1 = inlined_call_operand.vmem [shape: f32[16,8], index: 1, kind: input, shape index: {}]   ;;  %s1514_s2 = inlined_call_operand.vmem [shape: bf16[32,16], index: 2, kind: input, shape index: {}]   ;;  %s1515_s3 = inlined_call_operand.vmem [shape: f32[1,16], index: 3, kind: input, shape index: {}]   ;;  %s1516_s4 = inlined_call_operand.vmem [shape: f32[1,16], index: 4, kind: input, shape index: {}]   ;;  %s1517_s5 = inlined_call_operand.vmem [shape: f32[2,32], index: 5, kind: input, shape index: {}]   ;;  %s1518_s6 = inlined_call_operand.vmem [shape: f32[1,2], index: 6, kind: input, shape index: {}]   ;;  %s1519_s7 = inlined_call_operand.vmem [shape: f32[16,2], index: 7, kind: output, shape index: {}]  }
   0x1 LB: > { %s1097_s25 = sadd.s32 4294967295, %s1220_s24   ;;  %p1101_p0 = scmp.ge.s32.totalorder %s1220_s24, 1  ;;  %s1220_s24 = sphi %s1263_s24, %s17_s24  }
   0x2   : > { %p247_p1 = scmp.lt.s32.totalorder %s1220_s24, 3 }
   0x4   : > { %p248_p2 = pnand %p1101_p0, %p247_p1 }
   0x5   : > { %v1156_v0 = vld [vmem:[%s1514_s2] sm:$0xff] (!%p248_p2)   ;;  %s1102_s28 = sshll.u32 (!%p248_p2), %s1097_s25, 3  ;;  %v476_v1 = vlaneseq (!%p248_p2)  ;;  %v1157_v2 = vld [vmem:[%s1514_s2 + $0x8] sm:$0xff] (!%p248_p2)   ;;  %p288_p4 = scmp.lt.s32.totalorder (!%p248_p2), %s1097_s25, 1  ;;  %vm348_vm0 = vcmask (!%p248_p2), 261120   ;;  %vm449_vm1 = vcmask (!%p248_p2), 130048  }
   0x6   : > { %251 = sbr.rel (%p248_p2) target bundleno = 1340 (0x53c), region = 48  ;;  %p283_p3 = scmp.lt.s32.totalorder (!%p248_p2), %s1102_s28, 15  ;;  %1129 = vmatprep.subr.bf16.mxu0 (!%p248_p2), %v1156_v0  ;;  %1141 = vmatprep.subr.bf16.mxu1 (!%p248_p2), %v1156_v0  ;;  %v1106_v21 = vld [vmem:[%s1515_s3] ss:$0 sm:$0xff] (!%p248_p2)  ;;  %v1222_v63 = vmov (!%p248_p2), 0   ;;  %vm614_vm2 = vcmask (!%p248_p2), 1041409  }
   0x7   : > { %v1278_v3 = vshrl.u32 (!%p248_p2), %v476_v1, 7  ;;  %1130 = vmatpush3.bf16.msra.mxu0 (!%p248_p2), %v1156_v0  ;;  %1143 = vmatpush3.bf16.msra.mxu1 (!%p248_p2), %v1156_v0  ;;  %v1117_v38 = vld [vmem:[%s1516_s4] ss:$0 sm:$0xff] (!%p248_p2)  ;;  %vm616_vm3 = vcmask (!%p248_p2), 1042434   ;;  %vm618_vm4 = vcmask (!%p248_p2), 1043459   ;;  %vm620_vm5 = vcmask (!%p248_p2), 1044484  }
   0x8   : > { %1131 = vmatprep.subr.bf16.mxu0 (!%p248_p2), %v1157_v2  ;;  %1142 = vmatprep.subr.bf16.mxu1 (!%p248_p2), %v1157_v2  ;;  %vm622_vm6 = vcmask (!%p248_p2), 1045509   ;;  %vm624_vm7 = vcmask (!%p248_p2), 1046534   ;;  %vm626_vm8 = vcmask (!%p248_p2), 1047559   ;;  %vm629_vm9 = vcmask (!%p248_p2), 64512  }
   0x9   : > { %v1283_v4 = vsub.s32 (!%p248_p2), 1, %v1278_v3  ;;  %v1290_v5 = vsub.s32 (!%p248_p2), 0, %v1278_v3  ;;  %v1304_v9 = vsub.s32 (!%p248_p2), 2, %v1278_v3  ;;  %v1311_v12 = vsub.s32 (!%p248_p2), 4, %v1278_v3  ;;  %1154 = vset.pattern.permute.xlu1 (!%p248_p2), %v1222_v63  ;;  %1155 = vset.pattern.permute.xlu0 (!%p248_p2), %v1222_v63 }
   0xa   : > { %v1328_v16 = vsub.s32 (!%p248_p2), 3, %v1278_v3  ;;  %v1335_v19 = vsub.s32 (!%p248_p2), 5, %v1278_v3  ;;  %v1354_v0 = vsub.s32 (!%p248_p2), 7, %v1278_v3  ;;  %vm1020_vm10 = vcmask (!%p248_p2), 7168  }
   0xb   : > { %1132 = vmatpush3.bf16.msra.mxu0 (!%p248_p2), %v1157_v2  ;;  %1144 = vmatpush3.bf16.msra.mxu1 (!%p248_p2), %v1157_v2  ;;  %vm1030_vm11 = vcmask (!%p248_p2), 15360  }
   0xd   : > { %s1521_s28 = smov (!%p283_p3, %s1102_s28), 15  ;;  %s1523_s25 = smov (!%p288_p4, %s1097_s25), 1 }
   0xe   : > { %s1103_s8 = sshll.u32 %s1521_s28, 2  ;;  %s1104_s12 = sshll.u32 %s1523_s25, 3 }
   0xf   : > { %s286_s11 = scalar_lea.vmem %s1512_s0, %s1103_s8  ;;  %s291_s15 = scalar_lea.vmem %s1513_s1, %s1104_s12 }
  0x10   : > { %v1292_v6 = vld [vmem:[%s286_s11] sm:$0xff]   ;;  %v1294_v7 = vld [vmem:[%s286_s11 + $0x10] sm:$0xff]   ;;  %v1296_v8 = vld [vmem:[%s286_s11 + $0x8] sm:$0xff]   ;;  %s295_s30 = scalar_lea.vmem %s1519_s7, %s1104_s12 }
  0x11   : > { %v1306_v10 = vld [vmem:[%s286_s11 + $0x18] sm:$0xff]   ;;  %v1308_v11 = vld [vmem:[%s291_s15] sm:$0xff]  ;;  %1133 = vmatprep.mubr.msk.bf16.mxu0 %vm348_vm0, %v1292_v6  ;;  %1137 = vmatprep.mubr.msk.bf16.mxu1 %vm348_vm0, %v1294_v7 }
  0x12   : > { %v486_v13 = vrot.slane %v1308_v11, %v1283_v4  ;;  %v479_v14 = vrot.slane %v1308_v11, %v1290_v5  ;;  %1134 = vmatmul.mubr.msk.bf16.vlgmr.msra.gmra.mrb[0].mxu0 %vm348_vm0, %v1296_v8  ;;  %1138 = vmatmul.mubr.msk.bf16.vlgmr.msra.gmra.mrb[0].mxu1 %vm348_vm0, %v1306_v10  ;;  %v493_v15 = vrot.slane %v1308_v11, %v1304_v9 }
  0x13   : > { %v507_v17 = vrot.slane %v1308_v11, %v1311_v12  ;;  %v500_v18 = vrot.slane %v1308_v11, %v1328_v16  ;;  %v514_v20 = vrot.slane %v1308_v11, %v1335_v19  ;;  %v528_v2 = vrot.slane %v1308_v11, %v1354_v0 }
  0x14   : > { %488 = vbcast.lane.b32.xlu1 %v486_v13, 256  ;;  %481 = vbcast.lane.b32.xlu0 %v479_v14, 256  ;;  %v1359_v13 = vsub.s32 6, %v1278_v3 }
  0x16   : > { %v521_v14 = vrot.slane %v1308_v11, %v1359_v13 }
  0x18   : > { %495 = vbcast.lane.b32.xlu1 %v493_v15, 256  ;;  %509 = vbcast.lane.b32.xlu0 %v507_v17, 256 }
  0x1c   : > { %502 = vbcast.lane.b32.xlu1 %v500_v18, 256 }
  0x20   : > { %516 = vbcast.lane.b32.xlu1 %v514_v20, 256 }
  0x86   : > { %v489_v15 = vpop.permute.xlu1 %488  ;;  %v482_v20 = vpop.permute.xlu0 %481 }
  0x8a   : > { %v496_v17 = vpop.permute.xlu1 %495 }
  0x8e   : > { %v503_v18 = vpop.permute.xlu1 %502 }
  0xe5   : > { %v1135_v22 = vpop.f32.mrb[0].mxu0  ;;  %v1139_v23 = vpop.f32.mrb[0].mxu1 }
  0xe6   : > { %v404_v24 = vadd.f32 %v1135_v22, %v1106_v21  ;;  %v420_v25 = vadd.f32 %v1139_v23, %v1106_v21  ;;  %v395_v26 = vpop.f32.mrb[1].mxu0  ;;  %v411_v27 = vpop.f32.mrb[1].mxu1 }
  0xe7   : > { %v396_v28 = vadd.f32 %v1106_v21, %v395_v26  ;;  %v412_v29 = vadd.f32 %v1106_v21, %v411_v27  ;;  %v1136_v30 = vpop.f32.mrb[2].mxu0  ;;  %v1140_v31 = vpop.f32.mrb[2].mxu1 }
  0xe8   : > { %1166 = vtanh.f32 %v404_v24  ;;  %v407_v32 = vadd.f32 %v1136_v30, %v1106_v21  ;;  %v398_v33 = vpop.f32.mrb[3].mxu0  ;;  %v414_v34 = vpop.f32.mrb[3].mxu1  ;;  %v423_v35 = vadd.f32 %v1140_v31, %v1106_v21 }
  0xe9   : > { %1168 = vtanh.f32 %v420_v25  ;;  %v415_v36 = vadd.f32 %v1106_v21, %v414_v34  ;;  %v399_v37 = vadd.f32 %v1106_v21, %v398_v33  ;;  %v517_v21 = vpop.permute.xlu1 %516  ;;  %v510_v22 = vpop.permute.xlu0 %509 }
  0xea   : > { %1170 = vtanh.f32 %v396_v28 }
  0xeb   : > { %1172 = vtanh.f32 %v412_v29 }
  0xec   : > { %1174 = vtanh.f32 %v407_v32 }
  0xed   : > { %1176 = vtanh.f32 %v423_v35 }
  0xee   : > { %1178 = vtanh.f32 %v415_v36 }
  0xef   : > { %1180 = vtanh.f32 %v399_v37 }
  0xf2   : > { %v1167_v39 = vpop.eup %1166 }
  0xf3   : > { %v1169_v40 = vpop.eup %1168  ;;  %v443_v41 = vmul.f32 %v1167_v39, %v1117_v38 }
  0xf4   : > { %v1171_v42 = vpop.eup %1170  ;;  %v447_v43 = vmul.f32 %v1169_v40, %v1117_v38 }
  0xf5   : > { %v1173_v44 = vpop.eup %1172  ;;  %v456_v45 = vsel %vm449_vm1, %v443_v41, 0.0  ;;  %v441_v46 = vmul.f32 %v1171_v42, %v1117_v38  ;;  %v581_v41 = vand.u32 127, %v476_v1 }
  0xf6   : > { %v1175_v47 = vpop.eup %1174  ;;  %v468_v48 = vsel %vm449_vm1, %v447_v43, 0.0  ;;  %457 = vadd.xlane.f32.xlu1 %v456_v45  ;;  %v445_v55 = vmul.f32 %v1173_v44, %v1117_v38 }
  0xf7   : > { %v1177_v49 = vpop.eup %1176  ;;  %469 = vadd.xlane.f32.xlu0 %v468_v48  ;;  %v444_v50 = vmul.f32 %v1175_v47, %v1117_v38  ;;  %v450_v51 = vsel %vm449_vm1, %v441_v46, 0.0  ;;  %v1380_v44 = vsub.s32 %v581_v41, %v1278_v3 }
  0xf8   : > { %v448_v53 = vmul.f32 %v1177_v49, %v1117_v38  ;;  %v1179_v54 = vpop.eup %1178  ;;  %v462_v59 = vsel %vm449_vm1, %v445_v55, 0.0 }
  0xf9   : > { %v459_v52 = vsel %vm449_vm1, %v444_v50, 0.0  ;;  %v1181_v56 = vpop.eup %1180  ;;  %v446_v58 = vmul.f32 %v1179_v54, %v1117_v38 }
  0xfa   : > { %460 = vadd.xlane.f32.xlu1 %v459_v52  ;;  %v471_v57 = vsel %vm449_vm1, %v448_v53, 0.0  ;;  %v442_v60 = vmul.f32 %v1181_v56, %v1117_v38 }
  0xfb   : > { %451 = vadd.xlane.f32.xlu0 %v450_v51  ;;  %v465_v61 = vsel %vm449_vm1, %v446_v58, 0.0 }
  0xfc   : > { %v453_v62 = vsel %vm449_vm1, %v442_v60, 0.0 }
  0xfe   : > { %472 = vadd.xlane.f32.xlu1 %v471_v57 }
  0xff   : > { %463 = vadd.xlane.f32.xlu0 %v462_v59 }
 0x102   : > { %466 = vadd.xlane.f32.xlu1 %v465_v61 }
 0x103   : > { %454 = vadd.xlane.f32.xlu0 %v453_v62 }
 0x113   : > { %530 = vbcast.lane.b32.xlu1 %v528_v2, 256 }
 0x119   : > { %523 = vbcast.lane.b32.xlu0 %v521_v14, 256 }
 0x183   : > { %v458_v23 = vpop.xlane.xlu1 %457 }
 0x184   : > { %v470_v24 = vpop.xlane.xlu0 %469  ;;  %v1363_v25 = vadd.f32 %v496_v17, %v458_v23 }
 0x186   : > { %563 = vperm.xlu1 %1154, %v1363_v25  }
 0x187   : > { %v461_v26 = vpop.xlane.xlu1 %460 }
 0x188   : > { %v452_v27 = vpop.xlane.xlu0 %451  ;;  %v1366_v11 = vadd.f32 %v503_v18, %v461_v26 }
 0x189   : > { %v540_v28 = vadd.f32 %v482_v20, %v452_v27 }
 0x18b   : > { %557 = vperm.xlu0 %1155, %v540_v28   ;;  %v473_v29 = vpop.xlane.xlu1 %472 }
 0x18c   : > { %v464_v30 = vpop.xlane.xlu0 %463 }
 0x18d   : > { %v544_v37 = vadd.f32 %v510_v22, %v464_v30 }
 0x18f   : > { %566 = vperm.xlu0 %1155, %v1366_v11   ;;  %v467_v31 = vpop.xlane.xlu1 %466 }
 0x190   : > { %v1369_v32 = vadd.f32 %v517_v21, %v467_v31  ;;  %v455_v33 = vpop.xlane.xlu0 %454 }
 0x191   : > { %v541_v34 = vadd.f32 %v489_v15, %v455_v33 }
 0x193   : > { %572 = vperm.xlu0 %1155, %v1369_v32   ;;  %560 = vperm.xlu1 %1154, %v541_v34   ;;  %v531_v35 = vpop.permute.xlu1 %530 }
 0x194   : > { %v1372_v36 = vadd.f32 %v531_v35, %v473_v29  ;;  %v524_v38 = vpop.permute.xlu0 %523 }
 0x195   : > { %v1375_v39 = vadd.f32 %v524_v38, %v470_v24 }
 0x197   : > { %578 = vperm.xlu0 %1155, %v1372_v36   ;;  %569 = vperm.xlu1 %1154, %v544_v37  }
 0x19b   : > { %575 = vperm.xlu1 %1154, %v1375_v39  }
 0x205   : > { %v564_v42 = vpop.permute.xlu1 %563 }
 0x206   : > { %v593_v49 = vrot.slane %v564_v42, %v1380_v44 }
 0x20a   : > { %v558_v40 = vpop.permute.xlu0 %557 }
 0x20b   : > { %v585_v46 = vrot.slane %v558_v40, %v1380_v44 }
 0x20e   : > { %v567_v43 = vpop.permute.xlu0 %566 }
 0x20f   : > { %v597_v50 = vrot.slane %v567_v43, %v1380_v44 }
 0x212   : > { %v561_v45 = vpop.permute.xlu1 %560  ;;  %v573_v48 = vpop.permute.xlu0 %572 }
 0x213   : > { %v589_v47 = vrot.slane %v561_v45, %v1380_v44  ;;  %v605_v56 = vrot.slane %v573_v48, %v1380_v44 }
 0x215   : > { %v615_v1 = vsel %vm614_vm2, %v589_v47, %v585_v46 }
 0x216   : > { %v617_v51 = vsel %vm616_vm3, %v593_v49, %v615_v1  ;;  %v570_v3 = vpop.permute.xlu1 %569  ;;  %v579_v55 = vpop.permute.xlu0 %578 }
 0x217   : > { %v601_v52 = vrot.slane %v570_v3, %v1380_v44  ;;  %v619_v53 = vsel %vm618_vm4, %v597_v50, %v617_v51  ;;  %v613_v59 = vrot.slane %v579_v55, %v1380_v44 }
 0x219   : > { %v621_v54 = vsel %vm620_vm5, %v601_v52, %v619_v53 }
 0x21a   : > { %v576_v57 = vpop.permute.xlu1 %575  ;;  %v623_v60 = vsel %vm622_vm6, %v605_v56, %v621_v54 }
 0x21b   : > { %v609_v58 = vrot.slane %v576_v57, %v1380_v44 }
 0x21d   : > { %v625_v61 = vsel %vm624_vm7, %v609_v58, %v623_v60 }
 0x21e   : > { %v627_v62 = vsel %vm626_vm8, %v613_v59, %v625_v61 }
 0x21f   : > { %v630_v63 = vsel %vm629_vm9, %v627_v62, -inf }
 0x220   : > { %631 = vmax.xlane.f32.xlu1 %v630_v63 }
 0x2ad   : > { %v632_v2 = vpop.xlane.xlu1 %631 }
 0x2ae   : > { %v637_v14 = vrot.slane %v632_v2, %v1290_v5  ;;  %v641_v15 = vrot.slane %v632_v2, %v1283_v4  ;;  %v645_v17 = vrot.slane %v632_v2, %v1304_v9  ;;  %v649_v22 = vrot.slane %v632_v2, %v1328_v16 }
 0x2af   : > { %v653_v26 = vrot.slane %v632_v2, %v1311_v12  ;;  %v657_v30 = vrot.slane %v632_v2, %v1335_v19 }
 0x2b0   : > { %v674_v18 = vsub.f32 %v540_v28, %v637_v14  ;;  %v675_v20 = vsub.f32 %v541_v34, %v641_v15  ;;  %v676_v23 = vsub.f32 %v1363_v25, %v645_v17  ;;  %v677_v27 = vsub.f32 %v1366_v11, %v649_v22 }
 0x2b1   : > { %v678_v31 = vsub.f32 %v544_v37, %v653_v26  ;;  %v661_v34 = vrot.slane %v632_v2, %v1359_v13  ;;  %v679_v25 = vsub.f32 %v1369_v32, %v657_v30  ;;  %v665_v11 = vrot.slane %v632_v2, %v1354_v0 }
 0x2b2   : > { %v682_v21 = vmul.f32 1.442695, %v674_v18  ;;  %v684_v24 = vmul.f32 1.442695, %v675_v20  ;;  %v686_v29 = vmul.f32 1.442695, %v676_v23 }
 0x2b3   : > { %v688_v33 = vmul.f32 1.442695, %v677_v27  ;;  %v690_v35 = vmul.f32 1.442695, %v678_v31  ;;  %v680_v37 = vsub.f32 %v1375_v39, %v661_v34  ;;  %v692_v40 = vmul.f32 1.442695, %v679_v25 }
 0x2b4   : > { %1182 = vpow2.f32 %v682_v21  ;;  %v681_v42 = vsub.f32 %v1372_v36, %v665_v11 }
 0x2b5   : > { %1184 = vpow2.f32 %v684_v24  ;;  %v694_v32 = vmul.f32 1.442695, %v680_v37 }
 0x2b6   : > { %1186 = vpow2.f32 %v686_v29  ;;  %v696_v45 = vmul.f32 1.442695, %v681_v42 }
 0x2b7   : > { %1188 = vpow2.f32 %v688_v33 }
 0x2b8   : > { %1190 = vpow2.f32 %v690_v35 }
 0x2b9   : > { %1192 = vpow2.f32 %v692_v40 }
 0x2ba   : > { %1194 = vpow2.f32 %v694_v32 }
 0x2bb   : > { %1196 = vpow2.f32 %v696_v45 }
 0x2be   : > { %v1406_v28 = vpop.eup %1182 }
 0x2bf   : > { %707 = vperm.xlu0 %1155, %v1406_v28   ;;  %v1411_v38 = vpop.eup %1184 }
 0x2c0   : > { %v1416_v41 = vpop.eup %1186 }
 0x2c1   : > { %v1420_v43 = vpop.eup %1188 }
 0x2c2   : > { %v1191_v46 = vpop.eup %1190 }
 0x2c3   : > { %710 = vperm.xlu0 %1155, %v1411_v38   ;;  %v1423_v39 = vpop.eup %1192 }
 0x2c4   : > { %v1426_v47 = vpop.eup %1194 }
 0x2c5   : > { %v1429_v36 = vpop.eup %1196 }
 0x2c7   : > { %713 = vperm.xlu0 %1155, %v1416_v41  }
 0x2cb   : > { %716 = vperm.xlu0 %1155, %v1420_v43  }
 0x2cf   : > { %719 = vperm.xlu0 %1155, %v1191_v46  }
 0x2d3   : > { %722 = vperm.xlu0 %1155, %v1423_v39  }
 0x2d7   : > { %725 = vperm.xlu0 %1155, %v1426_v47  }
 0x2db   : > { %728 = vperm.xlu0 %1155, %v1429_v36  }
 0x33e   : > { %v708_v48 = vpop.permute.xlu0 %707 }
 0x33f   : > { %v733_v54 = vrot.slane %v708_v48, %v1380_v44 }
 0x342   : > { %v711_v49 = vpop.permute.xlu0 %710 }
 0x343   : > { %v737_v52 = vrot.slane %v711_v49, %v1380_v44  ;;  %v830_v49 = vunpack.c.l.bf16 %v1292_v6 }
 0x345   : > { %v762_v58 = vsel %vm614_vm2, %v737_v52, %v733_v54 }
 0x346   : > { %v714_v50 = vpop.permute.xlu0 %713 }
 0x347   : > { %v741_v53 = vrot.slane %v714_v50, %v1380_v44 }
 0x349   : > { %v763_v60 = vsel %vm616_vm3, %v741_v53, %v762_v58  ;;  %v833_v53 = vunpack.c.h.bf16 %v1296_v8 }
 0x34a   : > { %v717_v1 = vpop.permute.xlu0 %716 }
 0x34b   : > { %v745_v55 = vrot.slane %v717_v1, %v1380_v44 }
 0x34d   : > { %v764_v62 = vsel %vm618_vm4, %v745_v55, %v763_v60 }
 0x34e   : > { %v720_v51 = vpop.permute.xlu0 %719 }
 0x34f   : > { %v749_v56 = vrot.slane %v720_v51, %v1380_v44 }
 0x351   : > { %v765_v63 = vsel %vm620_vm5, %v749_v56, %v764_v62 }
 0x352   : > { %v723_v3 = vpop.permute.xlu0 %722 }
 0x353   : > { %v753_v59 = vrot.slane %v723_v3, %v1380_v44 }
 0x355   : > { %v766_v14 = vsel %vm622_vm6, %v753_v59, %v765_v63 }
 0x356   : > { %v726_v57 = vpop.permute.xlu0 %725 }
 0x357   : > { %v757_v61 = vrot.slane %v726_v57, %v1380_v44 }
 0x359   : > { %v767_v17 = vsel %vm624_vm7, %v757_v61, %v766_v14 }
 0x35a   : > { %v729_v2 = vpop.permute.xlu0 %728 }
 0x35b   : > { %v761_v15 = vrot.slane %v729_v2, %v1380_v44 }
 0x35d   : > { %v768_v18 = vsel %vm626_vm8, %v761_v15, %v767_v17 }
 0x35e   : > { %v770_v20 = vsel %vm629_vm9, %v768_v18, 0.0 }
 0x35f   : > { %771 = vadd.xlane.f32.xlu0 %v770_v20 }
 0x3ec   : > { %v772_v21 = vpop.xlane.xlu0 %771 }
 0x3ed   : > { %v793_v22 = vrot.slane %v772_v21, %v1311_v12  ;;  %v781_v23 = vrot.slane %v772_v21, %v1283_v4  ;;  %v785_v24 = vrot.slane %v772_v21, %v1304_v9  ;;  %v777_v26 = vrot.slane %v772_v21, %v1290_v5 }
 0x3ee   : > { %v789_v44 = vrot.slane %v772_v21, %v1328_v16  ;;  %v797_v31 = vrot.slane %v772_v21, %v1335_v19  ;;  %v801_v4 = vrot.slane %v772_v21, %v1359_v13  ;;  %v805_v16 = vrot.slane %v772_v21, %v1354_v0 }
 0x3ef   : > { %1198 = vrcp.f32 %v793_v22  ;;  %v831_v0 = vunpack.c.h.bf16 %v1292_v6  ;;  %v835_v6 = vunpack.c.h.bf16 %v1294_v7  ;;  %v836_v21 = vunpack.c.l.bf16 %v1306_v10 }
 0x3f0   : > { %1200 = vrcp.f32 %v781_v23 }
 0x3f1   : > { %1202 = vrcp.f32 %v785_v24 }
 0x3f2   : > { %1204 = vrcp.f32 %v777_v26 }
 0x3f3   : > { %1206 = vrcp.f32 %v789_v44 }
 0x3f4   : > { %1208 = vrcp.f32 %v797_v31 }
 0x3f5   : > { %1210 = vrcp.f32 %v801_v4 }
 0x3f6   : > { %1212 = vrcp.f32 %v805_v16 }
 0x3f9   : > { %v1199_v27 = vpop.eup %1198 }
 0x3fa   : > { %v1201_v29 = vpop.eup %1200  ;;  %v823_v30 = vmul.f32 %v1199_v27, %v1191_v46 }
 0x3fb   : > { %v817_v12 = vmul.f32 %v1201_v29, %v1411_v38  ;;  %v1203_v33 = vpop.eup %1202 }
 0x3fc   : > { %860 = vperm.xlu0 %1155, %v823_v30   ;;  %v819_v9 = vmul.f32 %v1203_v33, %v1416_v41  ;;  %v1205_v5 = vpop.eup %1204  ;;  %v837_v33 = vunpack.c.h.bf16 %v1306_v10 }
 0x3fd   : > { %845 = vperm.xlu1 %1154, %v817_v12   ;;  %v815_v34 = vmul.f32 %v1205_v5, %v1406_v28  ;;  %v1207_v25 = vpop.eup %1206  ;;  %v834_v28 = vunpack.c.l.bf16 %v1294_v7 }
 0x3fe   : > { %v821_v19 = vmul.f32 %v1207_v25, %v1420_v43  ;;  %v1209_v35 = vpop.eup %1208  ;;  %v832_v43 = vunpack.c.l.bf16 %v1296_v8  ;;  %v1118_v25 = vld [vmem:[%s1517_s5] ss:$0 sm:$0xff] }
 0x3ff   : > { %v825_v38 = vmul.f32 %v1209_v35, %v1423_v39  ;;  %v1211_v11 = vpop.eup %1210 }
 0x400   : > { %v827_v13 = vmul.f32 %v1211_v11, %v1426_v47  ;;  %v1213_v37 = vpop.eup %1212 }
 0x401   : > { %850 = vperm.xlu1 %1154, %v819_v9   ;;  %v829_v40 = vmul.f32 %v1213_v37, %v1429_v36 }
 0x405   : > { %840 = vperm.xlu1 %1154, %v815_v34  }
 0x409   : > { %855 = vperm.xlu1 %1154, %v821_v19   ;;  %v1119_v19 = vld [vmem:[%s1517_s5 + $0x1] ss:$0 sm:$0xff] }
 0x40d   : > { %865 = vperm.xlu1 %1154, %v825_v38  }
 0x411   : > { %870 = vperm.xlu1 %1154, %v827_v13  }
 0x415   : > { %875 = vperm.xlu1 %1154, %v829_v40  }
 0x47b   : > { %v861_v41 = vpop.permute.xlu0 %860 }
 0x47c   : > { %v846_v42 = vpop.permute.xlu1 %845  ;;  %v882_v45 = vmul.f32 %v861_v41, %v834_v28 }
 0x47d   : > { %v879_v32 = vmul.f32 %v846_v42, %v831_v0 }
 0x47e   : > { %v914_v36 = vsel %vm348_vm0, %v882_v45, 0.0 }
 0x47f   : > { %v893_v46 = vsel %vm348_vm0, %v879_v32, 0.0  ;;  %v915_v54 = vrot.slane %v914_v36, 4 }
 0x480   : > { %v894_v39 = vrot.slane %v893_v46, 4  ;;  %v851_v48 = vpop.permute.xlu1 %850 }
 0x481   : > { %v880_v47 = vmul.f32 %v851_v48, %v832_v43  ;;  %v916_v62 = vadd.f32 %v915_v54, %v914_v36 }
 0x482   : > { %v895_v50 = vadd.f32 %v894_v39, %v893_v46 }
 0x483   : > { %v900_v1 = vsel %vm348_vm0, %v880_v47, 0.0  ;;  %v917_v22 = vrot.slane %v916_v62, 2 }
 0x484   : > { %v901_v51 = vrot.slane %v900_v1, 4  ;;  %v841_v3 = vpop.permute.xlu1 %840  ;;  %v896_v56 = vrot.slane %v895_v50, 2 }
 0x485   : > { %v878_v52 = vmul.f32 %v841_v3, %v830_v49  ;;  %v918_v4 = vadd.f32 %v917_v22, %v916_v62 }
 0x486   : > { %v902_v55 = vadd.f32 %v901_v51, %v900_v1  ;;  %v897_v2 = vadd.f32 %v896_v56, %v895_v50 }
 0x487   : > { %v886_v57 = vsel %vm348_vm0, %v878_v52, 0.0  ;;  %v919_v0 = vrot.slane %v918_v4, 1 }
 0x488   : > { %v903_v58 = vrot.slane %v902_v55, 2  ;;  %v887_v59 = vrot.slane %v886_v57, 4  ;;  %v856_v60 = vpop.permute.xlu1 %855  ;;  %v898_v24 = vrot.slane %v897_v2, 1 }
 0x489   : > { %v881_v61 = vmul.f32 %v856_v60, %v833_v53  ;;  %v920_v53 = vadd.f32 %v919_v0, %v918_v4  ;;  %v1120_v0 = vld [vmem:[%s1518_s6] ss:$0 sm:$0xff] }
 0x48a   : > { %v888_v63 = vadd.f32 %v887_v59, %v886_v57  ;;  %v904_v15 = vadd.f32 %v903_v58, %v902_v55  ;;  %v899_v5 = vadd.f32 %v898_v24, %v897_v2 }
 0x48b   : > { %v907_v14 = vsel %vm348_vm0, %v881_v61, 0.0 }
 0x48c   : > { %v889_v17 = vrot.slane %v888_v63, 2  ;;  %v866_v18 = vpop.permute.xlu1 %865  ;;  %v908_v8 = vrot.slane %v907_v14, 4  ;;  %v905_v27 = vrot.slane %v904_v15, 1  ;;  %v948_v42 = vmul.f32 %v1118_v25, %v899_v5 }
 0x48d   : > { %v883_v20 = vmul.f32 %v866_v18, %v835_v6  ;;  %v987_v32 = vmul.f32 %v1119_v19, %v899_v5  ;;  %v990_v18 = vmul.f32 %v1119_v19, %v920_v53 }
 0x48e   : > { %v890_v23 = vadd.f32 %v889_v17, %v888_v63  ;;  %v909_v26 = vadd.f32 %v908_v8, %v907_v14  ;;  %v906_v35 = vadd.f32 %v905_v27, %v904_v15  ;;  %v963_v54 = vrot.slane %v948_v42, 7 }
 0x48f   : > { %v921_v44 = vsel %vm348_vm0, %v883_v20, 0.0  ;;  %v1002_v55 = vrot.slane %v987_v32, 7  ;;  %v951_v17 = vmul.f32 %v1118_v25, %v920_v53 }
 0x490   : > { %v922_v7 = vrot.slane %v921_v44, 4  ;;  %v871_v29 = vpop.permute.xlu1 %870  ;;  %v891_v30 = vrot.slane %v890_v23, 1  ;;  %v910_v31 = vrot.slane %v909_v26, 2  ;;  %v988_v46 = vmul.f32 %v1119_v19, %v906_v35 }
 0x491   : > { %v884_v12 = vmul.f32 %v871_v29, %v836_v21  ;;  %v949_v56 = vmul.f32 %v1118_v25, %v906_v35 }
 0x492   : > { %v923_v9 = vadd.f32 %v922_v7, %v921_v44  ;;  %v911_v16 = vadd.f32 %v910_v31, %v909_v26  ;;  %v892_v37 = vadd.f32 %v891_v30, %v890_v23  ;;  %v1004_v57 = vrot.slane %v988_v46, 6 }
 0x493   : > { %v928_v34 = vsel %vm348_vm0, %v884_v12, 0.0  ;;  %v965_v8 = vrot.slane %v949_v56, 6  ;;  %v969_v30 = vrot.slane %v951_v17, 4  ;;  %v1008_v31 = vrot.slane %v990_v18, 4 }
 0x494   : > { %v924_v38 = vrot.slane %v923_v9, 2  ;;  %v929_v11 = vrot.slane %v928_v34, 4  ;;  %v876_v13 = vpop.permute.xlu1 %875  ;;  %v912_v10 = vrot.slane %v911_v16, 1  ;;  %v947_v49 = vmul.f32 %v1118_v25, %v892_v37 }
 0x495   : > { %v885_v40 = vmul.f32 %v876_v13, %v837_v33  ;;  %v986_v36 = vmul.f32 %v1119_v19, %v892_v37 }
 0x496   : > { %v925_v28 = vadd.f32 %v924_v38, %v923_v9  ;;  %v930_v41 = vadd.f32 %v929_v11, %v928_v34  ;;  %v913_v43 = vadd.f32 %v912_v10, %v911_v16  ;;  %v964_v60 = vsel %vm614_vm2, %v963_v54, %v947_v49 }
 0x497   : > { %v935_v45 = vsel %vm348_vm0, %v885_v40, 0.0  ;;  %v1003_v61 = vsel %vm614_vm2, %v1002_v55, %v986_v36  ;;  %v966_v26 = vsel %vm616_vm3, %v965_v8, %v964_v60 }
 0x498   : > { %v926_v39 = vrot.slane %v925_v28, 1  ;;  %v931_v48 = vrot.slane %v930_v41, 2  ;;  %v936_v47 = vrot.slane %v935_v45, 4  ;;  %v950_v50 = vmul.f32 %v1118_v25, %v913_v43 }
 0x499   : > { %v989_v1 = vmul.f32 %v1119_v19, %v913_v43  ;;  %v1005_v22 = vsel %vm616_vm3, %v1004_v57, %v1003_v61 }
 0x49a   : > { %v927_v51 = vadd.f32 %v926_v39, %v925_v28  ;;  %v932_v3 = vadd.f32 %v931_v48, %v930_v41  ;;  %v937_v52 = vadd.f32 %v936_v47, %v935_v45  ;;  %v967_v6 = vrot.slane %v950_v50, 5 }
 0x49b   : > { %v1006_v62 = vrot.slane %v989_v1, 5 }
 0x49c   : > { %v933_v58 = vrot.slane %v932_v3, 1  ;;  %v938_v59 = vrot.slane %v937_v52, 2  ;;  %v952_v63 = vmul.f32 %v1118_v25, %v927_v51  ;;  %v991_v2 = vmul.f32 %v1119_v19, %v927_v51 }
 0x49d   : > { %v1007_v24 = vsel %vm618_vm4, %v1006_v62, %v1005_v22  ;;  %v968_v29 = vsel %vm618_vm4, %v967_v6, %v966_v26 }
 0x49e   : > { %v934_v14 = vadd.f32 %v933_v58, %v932_v3  ;;  %v939_v15 = vadd.f32 %v938_v59, %v937_v52  ;;  %v971_v44 = vrot.slane %v952_v63, 3  ;;  %v1010_v27 = vrot.slane %v991_v2, 3 }
 0x49f   : > { %v1009_v5 = vsel %vm620_vm5, %v1008_v31, %v1007_v24  ;;  %v970_v16 = vsel %vm620_vm5, %v969_v30, %v968_v29 }
 0x4a0   : > { %v940_v20 = vrot.slane %v939_v15, 1  ;;  %v992_v21 = vmul.f32 %v1119_v19, %v934_v14  ;;  %v953_v23 = vmul.f32 %v1118_v25, %v934_v14  ;;  %v1011_v34 = vsel %vm622_vm6, %v1010_v27, %v1009_v5 }
 0x4a1   : > { %v972_v38 = vsel %vm622_vm6, %v971_v44, %v970_v16 }
 0x4a2   : > { %v941_v7 = vadd.f32 %v940_v20, %v939_v15  ;;  %v1012_v12 = vrot.slane %v992_v21, 2  ;;  %v973_v33 = vrot.slane %v953_v23, 2 }
 0x4a4   : > { %v993_v4 = vmul.f32 %v1119_v19, %v941_v7  ;;  %v954_v9 = vmul.f32 %v1118_v25, %v941_v7  ;;  %v1013_v13 = vsel %vm624_vm7, %v1012_v12, %v1011_v34  ;;  %v974_v37 = vsel %vm624_vm7, %v973_v33, %v972_v38 }
 0x4a6   : > { %v1014_v35 = vrot.slane %v993_v4, 1  ;;  %v975_v11 = vrot.slane %v954_v9, 1 }
 0x4a8   : > { %v1015_v10 = vsel %vm626_vm8, %v1014_v35, %v1013_v13  ;;  %v976_v19 = vsel %vm626_vm8, %v975_v11, %v974_v37 }
 0x4a9   : > { %v1017_v25 = vsel %vm348_vm0, %v1015_v10, 0.0  ;;  %v978_v40 = vsel %vm348_vm0, %v976_v19, 0.0 }
 0x4aa   : > { %1018 = vadd.xlane.f32.xlu0 %v1017_v25  ;;  %979 = vadd.xlane.f32.xlu1 %v978_v40 }
 0x537   : > { %v1019_v28 = vpop.xlane.xlu0 %1018  ;;  %v980_v41 = vpop.xlane.xlu1 %979 }
 0x538   : > { %v1021_v42 = vsel %vm1020_vm10, %v980_v41, %v1019_v28 }
 0x539   : > { %v1029_v32 = vadd.f32 %v1120_v0, %v1021_v42 }
 0x53b   : > { %1031 = vst.msk [vmem:[%s295_s30] sm:$0xff] %vm1030_vm11, %v1029_v32 }
 0x53c PF: > { %s17_s24 = sadd.s32 1, %s1220_s24  }
 0x53d   : > { %p14_p5 = scmp.ge.s32.totalorder %s17_s24, 4  }
 0x53f   :  { %16 = sbr.rel (!%p14_p5) target bundleno = 1 (0x1), region = 81 }

</bundles_post_ra>
